<compile_context>
chip_gen: v7x
topology: tpu7x:2x2x1
jax: 0.10.0
libtpu: 0.0.40
codegen_flags: <defaults>
</compile_context>

<pallas_src>
import jax
import jax.numpy as jnp
from jax import lax
from jax.experimental import pallas as pl
from jax.experimental.pallas import tpu as pltpu


def _round_up(x, m):
    return (x + m - 1) // m * m


def _pad_to(a, shape):
    pads = [(0, s - d) for d, s in zip(a.shape, shape)]
    if all(p == (0, 0) for p in pads):
        return a
    return jnp.pad(a, pads)


def _make_rnn_kernel(total_t, chunk, needs_mask):
    """Kernel factory; total_t / chunk / needs_mask are static Python values."""

    def rnn_kernel(xproj_ref, whh_ref, wfc_ref, bfc_ref, out_ref, h_ref):
        # grid = (batch_tiles, time_chunks); axis 1 is the serial recurrence.
        c = pl.program_id(1)

        @pl.when(c == 0)
        def _():
            h_ref[...] = jnp.zeros_like(h_ref)

        whh = whh_ref[...]            # hoisted out of the time loop
        base = c * chunk              # first global timestep of this chunk

        def step(t, h):
            pre = xproj_ref[t] + jnp.dot(h, whh,
                                         preferred_element_type=jnp.float32)
            h_new = jnp.tanh(pre)
            if needs_mask:
                # Padded tail timesteps must NOT update h (zero-padding alone
                # would be wrong: tanh(0 + h@Whh) still changes h).
                h_new = jnp.where(base + t < total_t, h_new, h)
            return h_new

        unroll = True if chunk <= 32 else 16
        h = lax.fori_loop(0, chunk, step, h_ref[...], unroll=unroll)
        h_ref[...] = h                # carry hidden state to the next chunk

        @pl.when(c == pl.num_programs(1) - 1)
        def _():
            out_ref[...] = (
                jnp.dot(h, wfc_ref[...], preferred_element_type=jnp.float32)
                + bfc_ref[...]
            ).astype(out_ref.dtype)

    return rnn_kernel


def simple_rnn_forward(x_idx, params):
    """x_idx: int32 [B, T] token indices. Returns [B, output_size] float32."""
    emb_table = params["embedding"]       # [V, H]
    w_ih_t = params["w_ih_t"]             # [H, H]   (W_ih transposed)
    w_hh_t = params["w_hh_t"]             # [H, H]   (W_hh transposed)
    b_rnn = params["b_rnn"]               # [1, H]   (b_ih + b_hh)
    w_fc_t = params["w_fc_t"]             # [H, O]   (W_fc transposed)
    b_fc = params["b_fc"]                 # [1, O]

    B, T = x_idx.shape
    H = emb_table.shape[1]
    O = w_fc_t.shape[1]
    assert T >= 1, "empty sequence not supported"

    # Hardware-aligned padded sizes.
    Bp = _round_up(B, 8)
    Hp = _round_up(H, 128)
    Op = _round_up(O, 128)

    # Batch tiling: split across the two v7x TensorCores when the padded batch
    # is large enough; otherwise a single size-1 "parallel" axis (no overhead).
    if Bp >= 16 and Bp % 16 == 0:
        n_btiles, TB = 2, Bp // 2
    else:
        n_btiles, TB = 1, Bp

    # ---- Chunk selection against a VMEM budget (v7x-safe: 48 MiB practical).
    VMEM_BUDGET = 48 * (1 << 20)
    fixed_bytes = (Hp * Hp + Hp * Op + Op + TB * Hp + 2 * TB * Op) * 4
    per_step_bytes = 2 * TB * Hp * 4          # double-buffered x_proj row/step
    avail = max(VMEM_BUDGET - fixed_bytes, per_step_bytes * 8)
    chunk = int(min(T, max(8, avail // per_step_bytes)))
    n_chunks = pl.cdiv(T, chunk)
    Tp = n_chunks * chunk
    needs_mask = Tp != T

    # ---- Glue (JAX): embedding gather + hoisted input projection -----------
    # TODO(synk): embedding lookup is a data-dependent gather; kept in JAX.
    w_ih_t_p = _pad_to(w_ih_t, (H, Hp))                          # [H, Hp]
    b_rnn_p = _pad_to(b_rnn, (1, Hp))                            # [1, Hp]
    emb_tb = emb_table[x_idx.T]                                  # [T, B, H]
    x_proj = (emb_tb.reshape(T * B, H) @ w_ih_t_p).reshape(T, B, Hp) + b_rnn_p
    x_proj = _pad_to(x_proj, (Tp, Bp, Hp))     # zero-pad batch + time tail
                                               # (tail steps masked in-kernel)

    w_hh_t_p = _pad_to(w_hh_t, (Hp, Hp))
    w_fc_t_p = _pad_to(w_fc_t, (Hp, Op))
    b_fc_p = _pad_to(b_fc, (1, Op))

    kernel = _make_rnn_kernel(T, chunk, needs_mask)

    def _build(use_single_buffer):
        const_kw = {"pipeline_mode": pl.Buffered(1)} if use_single_buffer else {}
        grid_spec = pltpu.PrefetchScalarGridSpec(
            num_scalar_prefetch=0,
            grid=(n_btiles, n_chunks),
            in_specs=[
                pl.BlockSpec((chunk, TB, Hp), lambda b, c: (c, b, 0)),
                pl.BlockSpec((Hp, Hp), lambda b, c: (0, 0), **const_kw),
                pl.BlockSpec((Hp, Op), lambda b, c: (0, 0), **const_kw),
                pl.BlockSpec((1, Op), lambda b, c: (0, 0), **const_kw),
            ],
            out_specs=pl.BlockSpec((TB, Op), lambda b, c: (b, 0)),
            scratch_shapes=[pltpu.VMEM((TB, Hp), jnp.float32)],   # hidden state
        )
        return pl.pallas_call(
            kernel,
            out_shape=jax.ShapeDtypeStruct((Bp, Op), jnp.float32),
            grid_spec=grid_spec,
            compiler_params=pltpu.CompilerParams(
                dimension_semantics=("parallel", "arbitrary"),
                vmem_limit_bytes=64 * (1 << 20),
            ),
        )

    try:
        out_p = _build(True)(x_proj, w_hh_t_p, w_fc_t_p, b_fc_p)
    except Exception:
        # Fallback if this JAX build rejects single-buffered constant operands.
        out_p = _build(False)(x_proj, w_hh_t_p, w_fc_t_p, b_fc_p)

    return out_p[:B, :O]


def reference_forward(x_idx, params):
    """Pure-JAX reference mirroring the PyTorch forward semantics."""
    emb = params["embedding"][x_idx]                  # [B, T, H]
    B, T, H = emb.shape
    h = jnp.zeros((B, H), jnp.float32)
    for t in range(T):
        h = jnp.tanh(emb[:, t, :] @ params["w_ih_t"]
                     + h @ params["w_hh_t"] + params["b_rnn"])
    return h @ params["w_fc_t"] + params["b_fc"]


def init_params(key, input_size, hidden_size, output_size):
    ks = jax.random.split(key, 7)
    s_rnn = 1.0 / jnp.sqrt(hidden_size)
    s_fc = 1.0 / jnp.sqrt(hidden_size)
    emb = jax.random.normal(ks[0], (input_size, hidden_size), jnp.float32)
    w_ih = jax.random.uniform(ks[1], (hidden_size, hidden_size), jnp.float32,
                              -s_rnn, s_rnn)
    w_hh = jax.random.uniform(ks[2], (hidden_size, hidden_size), jnp.float32,
                              -s_rnn, s_rnn)
    b_ih = jax.random.uniform(ks[3], (hidden_size,), jnp.float32, -s_rnn, s_rnn)
    b_hh = jax.random.uniform(ks[4], (hidden_size,), jnp.float32, -s_rnn, s_rnn)
    w_fc = jax.random.uniform(ks[5], (output_size, hidden_size), jnp.float32,
                              -s_fc, s_fc)
    b_fc = jax.random.uniform(ks[6], (output_size,), jnp.float32, -s_fc, s_fc)
    return {
        "embedding": emb,
        "w_ih_t": w_ih.T,                    # [H, H]
        "w_hh_t": w_hh.T,                    # [H, H]
        "b_rnn": (b_ih + b_hh)[None, :],     # [1, H]
        "w_fc_t": w_fc.T,                    # [H, O]
        "b_fc": b_fc[None, :],               # [1, O]
    }


if __name__ == "__main__":
    input_size = 16     # vocab size
    hidden_size = 32
    output_size = 8
    batch = 2
    seq_len = 8

    key = jax.random.PRNGKey(0)
    k_param, k_data = jax.random.split(key)
    params = init_params(k_param, input_size, hidden_size, output_size)
    x_idx = jax.random.randint(k_data, (batch, seq_len), 0, input_size,
                               dtype=jnp.int32)

    out = simple_rnn_forward(x_idx, params)
    out = jax.block_until_ready(out)

    ref = reference_forward(x_idx, params)
    assert out.shape == (batch, output_size)
    assert jnp.allclose(out, ref, rtol=1e-5, atol=1e-5), "mismatch vs reference"

    print("KERNEL_OK")
</pallas_src>

<mosaic_0001>
module attributes {stable_mosaic.version = 11 : i64} {
  func.func @rnn_kernel(%arg0: i32, %arg1: i32, %arg2: memref<8x8x128xf32, #tpu.memory_space<vmem>>, %arg3: memref<128x128xf32, #tpu.memory_space<vmem>>, %arg4: memref<128x128xf32, #tpu.memory_space<vmem>>, %arg5: memref<1x128xf32, #tpu.memory_space<vmem>>, %arg6: memref<8x128xf32, #tpu.memory_space<vmem>>, %arg7: memref<8x128xf32, #tpu.memory_space<vmem>>) attributes {dimension_semantics = [#tpu.dimension_semantics<parallel>, #tpu.dimension_semantics<arbitrary>], iteration_bounds = array<i64: 1, 1>, scalar_prefetch = 0 : i64, scratch_operands = 1 : i64, tpu.core_type = #tpu.core_type<tc>, window_params = [{transform_indices = @transform_0, window_bounds = array<i64: 8, 8, 128>}, {pipeline_mode = #tpu.pipeline_mode<synchronous>, transform_indices = @transform_1, window_bounds = array<i64: 128, 128>}, {pipeline_mode = #tpu.pipeline_mode<synchronous>, transform_indices = @transform_2, window_bounds = array<i64: 128, 128>}, {pipeline_mode = #tpu.pipeline_mode<synchronous>, transform_indices = @transform_3, window_bounds = array<i64: 1, 128>}, {transform_indices = @transform_4, window_bounds = array<i64: 8, 128>}]} {
    %c0_i32 = arith.constant 0 : i32
    %0 = arith.cmpi eq, %arg1, %c0_i32 : i32
    %1 = arith.extui %0 : i1 to i32
    %c0_i32_0 = arith.constant 0 : i32
    %2 = arith.cmpi ne, %1, %c0_i32_0 : i32
    scf.if %2 {
      %cst_32 = arith.constant 0.000000e+00 : f32
      %57 = vector.broadcast %cst_32 : f32 to vector<8x128xf32>
      %c0_33 = arith.constant 0 : index
      %c0_34 = arith.constant 0 : index
      %58 = vector.load %arg7[%c0_33, %c0_34] : memref<8x128xf32, #tpu.memory_space<vmem>>, vector<8x128xf32>
      tpu.vector_store %arg7[%c0_33, %c0_34], %57 {strides = array<i32>} : memref<8x128xf32, #tpu.memory_space<vmem>>, vector<8x128xf32>,
    } else {
    }
    %c0 = arith.constant 0 : index
    %c0_1 = arith.constant 0 : index
    %3 = vector.load %arg3[%c0, %c0_1] : memref<128x128xf32, #tpu.memory_space<vmem>>, vector<128x128xf32>
    %c0_2 = arith.constant 0 : index
    %c0_3 = arith.constant 0 : index
    %4 = vector.load %arg7[%c0_2, %c0_3] : memref<8x128xf32, #tpu.memory_space<vmem>>, vector<8x128xf32>
    %c0_i32_4 = arith.constant 0 : i32
    %5 = arith.index_cast %c0_i32_4 : i32 to index
    %c0_5 = arith.constant 0 : index
    %c0_6 = arith.constant 0 : index
    %6 = vector.load %arg2[%5, %c0_5, %c0_6] : memref<8x8x128xf32, #tpu.memory_space<vmem>>, vector<1x8x128xf32>
    %7 = vector.shape_cast %6 : vector<1x8x128xf32> to vector<8x128xf32>
    %cst = arith.constant dense<0.000000e+00> : vector<8x128xf32>
    %8 = tpu.matmul %4, %3, %cst {dimension_numbers = #tpu.dot_dimension_numbers<[1], [0], [0], [1], [0, 0, 1, 1], [], []>} : vector<8x128xf32>, vector<128x128xf32>, vector<8x128xf32> -> vector<8x128xf32>
    %9 = arith.addf %7, %8 : vector<8x128xf32>
    %10 = math.tanh %9 : vector<8x128xf32>
    %c1_i32 = arith.constant 1 : i32
    %11 = arith.index_cast %c1_i32 : i32 to index
    %c0_7 = arith.constant 0 : index
    %c0_8 = arith.constant 0 : index
    %12 = vector.load %arg2[%11, %c0_7, %c0_8] : memref<8x8x128xf32, #tpu.memory_space<vmem>>, vector<1x8x128xf32>
    %13 = vector.shape_cast %12 : vector<1x8x128xf32> to vector<8x128xf32>
    %cst_9 = arith.constant dense<0.000000e+00> : vector<8x128xf32>
    %14 = tpu.matmul %10, %3, %cst_9 {dimension_numbers = #tpu.dot_dimension_numbers<[1], [0], [0], [1], [0, 0, 1, 1], [], []>} : vector<8x128xf32>, vector<128x128xf32>, vector<8x128xf32> -> vector<8x128xf32>
    %15 = arith.addf %13, %14 : vector<8x128xf32>
    %16 = math.tanh %15 : vector<8x128xf32>
    %c2_i32 = arith.constant 2 : i32
    %17 = arith.index_cast %c2_i32 : i32 to index
    %c0_10 = arith.constant 0 : index
    %c0_11 = arith.constant 0 : index
    %18 = vector.load %arg2[%17, %c0_10, %c0_11] : memref<8x8x128xf32, #tpu.memory_space<vmem>>, vector<1x8x128xf32>
    %19 = vector.shape_cast %18 : vector<1x8x128xf32> to vector<8x128xf32>
    %cst_12 = arith.constant dense<0.000000e+00> : vector<8x128xf32>
    %20 = tpu.matmul %16, %3, %cst_12 {dimension_numbers = #tpu.dot_dimension_numbers<[1], [0], [0], [1], [0, 0, 1, 1], [], []>} : vector<8x128xf32>, vector<128x128xf32>, vector<8x128xf32> -> vector<8x128xf32>
    %21 = arith.addf %19, %20 : vector<8x128xf32>
    %22 = math.tanh %21 : vector<8x128xf32>
    %c3_i32 = arith.constant 3 : i32
    %23 = arith.index_cast %c3_i32 : i32 to index
    %c0_13 = arith.constant 0 : index
    %c0_14 = arith.constant 0 : index
    %24 = vector.load %arg2[%23, %c0_13, %c0_14] : memref<8x8x128xf32, #tpu.memory_space<vmem>>, vector<1x8x128xf32>
    %25 = vector.shape_cast %24 : vector<1x8x128xf32> to vector<8x128xf32>
    %cst_15 = arith.constant dense<0.000000e+00> : vector<8x128xf32>
    %26 = tpu.matmul %22, %3, %cst_15 {dimension_numbers = #tpu.dot_dimension_numbers<[1], [0], [0], [1], [0, 0, 1, 1], [], []>} : vector<8x128xf32>, vector<128x128xf32>, vector<8x128xf32> -> vector<8x128xf32>
    %27 = arith.addf %25, %26 : vector<8x128xf32>
    %28 = math.tanh %27 : vector<8x128xf32>
    %c4_i32 = arith.constant 4 : i32
    %29 = arith.index_cast %c4_i32 : i32 to index
    %c0_16 = arith.constant 0 : index
    %c0_17 = arith.constant 0 : index
    %30 = vector.load %arg2[%29, %c0_16, %c0_17] : memref<8x8x128xf32, #tpu.memory_space<vmem>>, vector<1x8x128xf32>
    %31 = vector.shape_cast %30 : vector<1x8x128xf32> to vector<8x128xf32>
    %cst_18 = arith.constant dense<0.000000e+00> : vector<8x128xf32>
    %32 = tpu.matmul %28, %3, %cst_18 {dimension_numbers = #tpu.dot_dimension_numbers<[1], [0], [0], [1], [0, 0, 1, 1], [], []>} : vector<8x128xf32>, vector<128x128xf32>, vector<8x128xf32> -> vector<8x128xf32>
    %33 = arith.addf %31, %32 : vector<8x128xf32>
    %34 = math.tanh %33 : vector<8x128xf32>
    %c5_i32 = arith.constant 5 : i32
    %35 = arith.index_cast %c5_i32 : i32 to index
    %c0_19 = arith.constant 0 : index
    %c0_20 = arith.constant 0 : index
    %36 = vector.load %arg2[%35, %c0_19, %c0_20] : memref<8x8x128xf32, #tpu.memory_space<vmem>>, vector<1x8x128xf32>
    %37 = vector.shape_cast %36 : vector<1x8x128xf32> to vector<8x128xf32>
    %cst_21 = arith.constant dense<0.000000e+00> : vector<8x128xf32>
    %38 = tpu.matmul %34, %3, %cst_21 {dimension_numbers = #tpu.dot_dimension_numbers<[1], [0], [0], [1], [0, 0, 1, 1], [], []>} : vector<8x128xf32>, vector<128x128xf32>, vector<8x128xf32> -> vector<8x128xf32>
    %39 = arith.addf %37, %38 : vector<8x128xf32>
    %40 = math.tanh %39 : vector<8x128xf32>
    %c6_i32 = arith.constant 6 : i32
    %41 = arith.index_cast %c6_i32 : i32 to index
    %c0_22 = arith.constant 0 : index
    %c0_23 = arith.constant 0 : index
    %42 = vector.load %arg2[%41, %c0_22, %c0_23] : memref<8x8x128xf32, #tpu.memory_space<vmem>>, vector<1x8x128xf32>
    %43 = vector.shape_cast %42 : vector<1x8x128xf32> to vector<8x128xf32>
    %cst_24 = arith.constant dense<0.000000e+00> : vector<8x128xf32>
    %44 = tpu.matmul %40, %3, %cst_24 {dimension_numbers = #tpu.dot_dimension_numbers<[1], [0], [0], [1], [0, 0, 1, 1], [], []>} : vector<8x128xf32>, vector<128x128xf32>, vector<8x128xf32> -> vector<8x128xf32>
    %45 = arith.addf %43, %44 : vector<8x128xf32>
    %46 = math.tanh %45 : vector<8x128xf32>
    %c7_i32 = arith.constant 7 : i32
    %47 = arith.index_cast %c7_i32 : i32 to index
    %c0_25 = arith.constant 0 : index
    %c0_26 = arith.constant 0 : index
    %48 = vector.load %arg2[%47, %c0_25, %c0_26] : memref<8x8x128xf32, #tpu.memory_space<vmem>>, vector<1x8x128xf32>
    %49 = vector.shape_cast %48 : vector<1x8x128xf32> to vector<8x128xf32>
    %cst_27 = arith.constant dense<0.000000e+00> : vector<8x128xf32>
    %50 = tpu.matmul %46, %3, %cst_27 {dimension_numbers = #tpu.dot_dimension_numbers<[1], [0], [0], [1], [0, 0, 1, 1], [], []>} : vector<8x128xf32>, vector<128x128xf32>, vector<8x128xf32> -> vector<8x128xf32>
    %51 = arith.addf %49, %50 : vector<8x128xf32>
    %52 = math.tanh %51 : vector<8x128xf32>
    %c8_i32 = arith.constant 8 : i32
    %c0_28 = arith.constant 0 : index
    %c0_29 = arith.constant 0 : index
    %53 = vector.load %arg7[%c0_28, %c0_29] : memref<8x128xf32, #tpu.memory_space<vmem>>, vector<8x128xf32>
    tpu.vector_store %arg7[%c0_28, %c0_29], %52 {strides = array<i32>} : memref<8x128xf32, #tpu.memory_space<vmem>>, vector<8x128xf32>,
    %c0_i32_30 = arith.constant 0 : i32
    %54 = arith.cmpi eq, %arg1, %c0_i32_30 : i32
    %55 = arith.extui %54 : i1 to i32
    %c0_i32_31 = arith.constant 0 : i32
    %56 = arith.cmpi ne, %55, %c0_i32_31 : i32
    scf.if %56 {
      %c0_32 = arith.constant 0 : index
      %c0_33 = arith.constant 0 : index
      %57 = vector.load %arg4[%c0_32, %c0_33] : memref<128x128xf32, #tpu.memory_space<vmem>>, vector<128x128xf32>
      %cst_34 = arith.constant dense<0.000000e+00> : vector<8x128xf32>
      %58 = tpu.matmul %52, %57, %cst_34 {dimension_numbers = #tpu.dot_dimension_numbers<[1], [0], [0], [1], [0, 0, 1, 1], [], []>} : vector<8x128xf32>, vector<128x128xf32>, vector<8x128xf32> -> vector<8x128xf32>
      %c0_35 = arith.constant 0 : index
      %c0_36 = arith.constant 0 : index
      %59 = vector.load %arg5[%c0_35, %c0_36] : memref<1x128xf32, #tpu.memory_space<vmem>>, vector<1x128xf32>
      %60 = vector.broadcast %59 : vector<1x128xf32> to vector<8x128xf32>
      %61 = arith.addf %58, %60 : vector<8x128xf32>
      %c0_37 = arith.constant 0 : index
      %c0_38 = arith.constant 0 : index
      %62 = vector.load %arg6[%c0_37, %c0_38] : memref<8x128xf32, #tpu.memory_space<vmem>>, vector<8x128xf32>
      tpu.vector_store %arg6[%c0_37, %c0_38], %61 {strides = array<i32>} : memref<8x128xf32, #tpu.memory_space<vmem>>, vector<8x128xf32>,
    } else {
    }
    return
  }
  func.func @transform_0(%arg0: i32, %arg1: i32) -> (i32, i32, i32) {
    %c0_i32 = arith.constant 0 : i32
    %c0_i32_0 = arith.constant 0 : i32
    return %arg1, %arg0, %c0_i32 : i32, i32, i32
  }
  func.func @transform_1(%arg0: i32, %arg1: i32) -> (i32, i32) {
    %c0_i32 = arith.constant 0 : i32
    %c0_i32_0 = arith.constant 0 : i32
    %c0_i32_1 = arith.constant 0 : i32
    return %c0_i32, %c0_i32_0 : i32, i32
  }
  func.func @transform_2(%arg0: i32, %arg1: i32) -> (i32, i32) {
    %c0_i32 = arith.constant 0 : i32
    %c0_i32_0 = arith.constant 0 : i32
    %c0_i32_1 = arith.constant 0 : i32
    return %c0_i32, %c0_i32_0 : i32, i32
  }
  func.func @transform_3(%arg0: i32, %arg1: i32) -> (i32, i32) {
    %c0_i32 = arith.constant 0 : i32
    %c0_i32_0 = arith.constant 0 : i32
    %c0_i32_1 = arith.constant 0 : i32
    return %c0_i32, %c0_i32_0 : i32, i32
  }
  func.func @transform_4(%arg0: i32, %arg1: i32) -> (i32, i32) {
    %c0_i32 = arith.constant 0 : i32
    %c0_i32_0 = arith.constant 0 : i32
    return %arg0, %c0_i32 : i32, i32
  }
}

module attributes {stable_mosaic.version = 11 : i64} {
  func.func @rnn_kernel(%arg0: i32, %arg1: i32, %arg2: memref<8x8x128xf32, #tpu.memory_space<vmem>>, %arg3: memref<128x128xf32, #tpu.memory_space<vmem>>, %arg4: memref<128x128xf32, #tpu.memory_space<vmem>>, %arg5: memref<1x128xf32, #tpu.memory_space<vmem>>, %arg6: memref<8x128xf32, #tpu.memory_space<vmem>>, %arg7: memref<8x128xf32, #tpu.memory_space<vmem>>) attributes {dimension_semantics = [#tpu.dimension_semantics<parallel>, #tpu.dimension_semantics<arbitrary>], iteration_bounds = array<i64: 1, 1>, scalar_prefetch = 0 : i64, scratch_operands = 1 : i64, tpu.core_type = #tpu.core_type<tc>, window_params = [{transform_indices = @transform_0, window_bounds = array<i64: 8, 8, 128>}, {pipeline_mode = #tpu.pipeline_mode<synchronous>, transform_indices = @transform_1, window_bounds = array<i64: 128, 128>}, {pipeline_mode = #tpu.pipeline_mode<synchronous>, transform_indices = @transform_2, window_bounds = array<i64: 128, 128>}, {pipeline_mode = #tpu.pipeline_mode<synchronous>, transform_indices = @transform_3, window_bounds = array<i64: 1, 128>}, {transform_indices = @transform_4, window_bounds = array<i64: 8, 128>}]} {
    %c0_i32 = arith.constant 0 : i32
    %0 = arith.cmpi eq, %arg1, %c0_i32 : i32
    %1 = arith.extui %0 : i1 to i32
    %c0_i32_0 = arith.constant 0 : i32
    %2 = arith.cmpi ne, %1, %c0_i32_0 : i32
    scf.if %2 {
      %cst_32 = arith.constant 0.000000e+00 : f32
      %57 = vector.broadcast %cst_32 : f32 to vector<8x128xf32>
      %c0_33 = arith.constant 0 : index
      %c0_34 = arith.constant 0 : index
      %58 = vector.load %arg7[%c0_33, %c0_34] : memref<8x128xf32, #tpu.memory_space<vmem>>, vector<8x128xf32>
      tpu.vector_store %arg7[%c0_33, %c0_34], %57 {strides = array<i32>} : memref<8x128xf32, #tpu.memory_space<vmem>>, vector<8x128xf32>,
    } else {
    }
    %c0 = arith.constant 0 : index
    %c0_1 = arith.constant 0 : index
    %3 = vector.load %arg3[%c0, %c0_1] : memref<128x128xf32, #tpu.memory_space<vmem>>, vector<128x128xf32>
    %c0_2 = arith.constant 0 : index
    %c0_3 = arith.constant 0 : index
    %4 = vector.load %arg7[%c0_2, %c0_3] : memref<8x128xf32, #tpu.memory_space<vmem>>, vector<8x128xf32>
    %c0_i32_4 = arith.constant 0 : i32
    %5 = arith.index_cast %c0_i32_4 : i32 to index
    %c0_5 = arith.constant 0 : index
    %c0_6 = arith.constant 0 : index
    %6 = vector.load %arg2[%5, %c0_5, %c0_6] : memref<8x8x128xf32, #tpu.memory_space<vmem>>, vector<1x8x128xf32>
    %7 = vector.shape_cast %6 : vector<1x8x128xf32> to vector<8x128xf32>
    %cst = arith.constant dense<0.000000e+00> : vector<8x128xf32>
    %8 = tpu.matmul %4, %3, %cst {dimension_numbers = #tpu.dot_dimension_numbers<[1], [0], [0], [1], [0, 0, 1, 1], [], []>} : vector<8x128xf32>, vector<128x128xf32>, vector<8x128xf32> -> vector<8x128xf32>
    %9 = arith.addf %7, %8 : vector<8x128xf32>
    %10 = math.tanh %9 : vector<8x128xf32>
    %c1_i32 = arith.constant 1 : i32
    %11 = arith.index_cast %c1_i32 : i32 to index
    %c0_7 = arith.constant 0 : index
    %c0_8 = arith.constant 0 : index
    %12 = vector.load %arg2[%11, %c0_7, %c0_8] : memref<8x8x128xf32, #tpu.memory_space<vmem>>, vector<1x8x128xf32>
    %13 = vector.shape_cast %12 : vector<1x8x128xf32> to vector<8x128xf32>
    %cst_9 = arith.constant dense<0.000000e+00> : vector<8x128xf32>
    %14 = tpu.matmul %10, %3, %cst_9 {dimension_numbers = #tpu.dot_dimension_numbers<[1], [0], [0], [1], [0, 0, 1, 1], [], []>} : vector<8x128xf32>, vector<128x128xf32>, vector<8x128xf32> -> vector<8x128xf32>
    %15 = arith.addf %13, %14 : vector<8x128xf32>
    %16 = math.tanh %15 : vector<8x128xf32>
    %c2_i32 = arith.constant 2 : i32
    %17 = arith.index_cast %c2_i32 : i32 to index
    %c0_10 = arith.constant 0 : index
    %c0_11 = arith.constant 0 : index
    %18 = vector.load %arg2[%17, %c0_10, %c0_11] : memref<8x8x128xf32, #tpu.memory_space<vmem>>, vector<1x8x128xf32>
    %19 = vector.shape_cast %18 : vector<1x8x128xf32> to vector<8x128xf32>
    %cst_12 = arith.constant dense<0.000000e+00> : vector<8x128xf32>
    %20 = tpu.matmul %16, %3, %cst_12 {dimension_numbers = #tpu.dot_dimension_numbers<[1], [0], [0], [1], [0, 0, 1, 1], [], []>} : vector<8x128xf32>, vector<128x128xf32>, vector<8x128xf32> -> vector<8x128xf32>
    %21 = arith.addf %19, %20 : vector<8x128xf32>
    %22 = math.tanh %21 : vector<8x128xf32>
    %c3_i32 = arith.constant 3 : i32
    %23 = arith.index_cast %c3_i32 : i32 to index
    %c0_13 = arith.constant 0 : index
    %c0_14 = arith.constant 0 : index
    %24 = vector.load %arg2[%23, %c0_13, %c0_14] : memref<8x8x128xf32, #tpu.memory_space<vmem>>, vector<1x8x128xf32>
    %25 = vector.shape_cast %24 : vector<1x8x128xf32> to vector<8x128xf32>
    %cst_15 = arith.constant dense<0.000000e+00> : vector<8x128xf32>
    %26 = tpu.matmul %22, %3, %cst_15 {dimension_numbers = #tpu.dot_dimension_numbers<[1], [0], [0], [1], [0, 0, 1, 1], [], []>} : vector<8x128xf32>, vector<128x128xf32>, vector<8x128xf32> -> vector<8x128xf32>
    %27 = arith.addf %25, %26 : vector<8x128xf32>
    %28 = math.tanh %27 : vector<8x128xf32>
    %c4_i32 = arith.constant 4 : i32
    %29 = arith.index_cast %c4_i32 : i32 to index
    %c0_16 = arith.constant 0 : index
    %c0_17 = arith.constant 0 : index
    %30 = vector.load %arg2[%29, %c0_16, %c0_17] : memref<8x8x128xf32, #tpu.memory_space<vmem>>, vector<1x8x128xf32>
    %31 = vector.shape_cast %30 : vector<1x8x128xf32> to vector<8x128xf32>
    %cst_18 = arith.constant dense<0.000000e+00> : vector<8x128xf32>
    %32 = tpu.matmul %28, %3, %cst_18 {dimension_numbers = #tpu.dot_dimension_numbers<[1], [0], [0], [1], [0, 0, 1, 1], [], []>} : vector<8x128xf32>, vector<128x128xf32>, vector<8x128xf32> -> vector<8x128xf32>
    %33 = arith.addf %31, %32 : vector<8x128xf32>
    %34 = math.tanh %33 : vector<8x128xf32>
    %c5_i32 = arith.constant 5 : i32
    %35 = arith.index_cast %c5_i32 : i32 to index
    %c0_19 = arith.constant 0 : index
    %c0_20 = arith.constant 0 : index
    %36 = vector.load %arg2[%35, %c0_19, %c0_20] : memref<8x8x128xf32, #tpu.memory_space<vmem>>, vector<1x8x128xf32>
    %37 = vector.shape_cast %36 : vector<1x8x128xf32> to vector<8x128xf32>
    %cst_21 = arith.constant dense<0.000000e+00> : vector<8x128xf32>
    %38 = tpu.matmul %34, %3, %cst_21 {dimension_numbers = #tpu.dot_dimension_numbers<[1], [0], [0], [1], [0, 0, 1, 1], [], []>} : vector<8x128xf32>, vector<128x128xf32>, vector<8x128xf32> -> vector<8x128xf32>
    %39 = arith.addf %37, %38 : vector<8x128xf32>
    %40 = math.tanh %39 : vector<8x128xf32>
    %c6_i32 = arith.constant 6 : i32
    %41 = arith.index_cast %c6_i32 : i32 to index
    %c0_22 = arith.constant 0 : index
    %c0_23 = arith.constant 0 : index
    %42 = vector.load %arg2[%41, %c0_22, %c0_23] : memref<8x8x128xf32, #tpu.memory_space<vmem>>, vector<1x8x128xf32>
    %43 = vector.shape_cast %42 : vector<1x8x128xf32> to vector<8x128xf32>
    %cst_24 = arith.constant dense<0.000000e+00> : vector<8x128xf32>
    %44 = tpu.matmul %40, %3, %cst_24 {dimension_numbers = #tpu.dot_dimension_numbers<[1], [0], [0], [1], [0, 0, 1, 1], [], []>} : vector<8x128xf32>, vector<128x128xf32>, vector<8x128xf32> -> vector<8x128xf32>
    %45 = arith.addf %43, %44 : vector<8x128xf32>
    %46 = math.tanh %45 : vector<8x128xf32>
    %c7_i32 = arith.constant 7 : i32
    %47 = arith.index_cast %c7_i32 : i32 to index
    %c0_25 = arith.constant 0 : index
    %c0_26 = arith.constant 0 : index
    %48 = vector.load %arg2[%47, %c0_25, %c0_26] : memref<8x8x128xf32, #tpu.memory_space<vmem>>, vector<1x8x128xf32>
    %49 = vector.shape_cast %48 : vector<1x8x128xf32> to vector<8x128xf32>
    %cst_27 = arith.constant dense<0.000000e+00> : vector<8x128xf32>
    %50 = tpu.matmul %46, %3, %cst_27 {dimension_numbers = #tpu.dot_dimension_numbers<[1], [0], [0], [1], [0, 0, 1, 1], [], []>} : vector<8x128xf32>, vector<128x128xf32>, vector<8x128xf32> -> vector<8x128xf32>
    %51 = arith.addf %49, %50 : vector<8x128xf32>
    %52 = math.tanh %51 : vector<8x128xf32>
    %c8_i32 = arith.constant 8 : i32
    %c0_28 = arith.constant 0 : index
    %c0_29 = arith.constant 0 : index
    %53 = vector.load %arg7[%c0_28, %c0_29] : memref<8x128xf32, #tpu.memory_space<vmem>>, vector<8x128xf32>
    tpu.vector_store %arg7[%c0_28, %c0_29], %52 {strides = array<i32>} : memref<8x128xf32, #tpu.memory_space<vmem>>, vector<8x128xf32>,
    %c0_i32_30 = arith.constant 0 : i32
    %54 = arith.cmpi eq, %arg1, %c0_i32_30 : i32
    %55 = arith.extui %54 : i1 to i32
    %c0_i32_31 = arith.constant 0 : i32
    %56 = arith.cmpi ne, %55, %c0_i32_31 : i32
    scf.if %56 {
      %c0_32 = arith.constant 0 : index
      %c0_33 = arith.constant 0 : index
      %57 = vector.load %arg4[%c0_32, %c0_33] : memref<128x128xf32, #tpu.memory_space<vmem>>, vector<128x128xf32>
      %cst_34 = arith.constant dense<0.000000e+00> : vector<8x128xf32>
      %58 = tpu.matmul %52, %57, %cst_34 {dimension_numbers = #tpu.dot_dimension_numbers<[1], [0], [0], [1], [0, 0, 1, 1], [], []>} : vector<8x128xf32>, vector<128x128xf32>, vector<8x128xf32> -> vector<8x128xf32>
      %c0_35 = arith.constant 0 : index
      %c0_36 = arith.constant 0 : index
      %59 = vector.load %arg5[%c0_35, %c0_36] : memref<1x128xf32, #tpu.memory_space<vmem>>, vector<1x128xf32>
      %60 = vector.broadcast %59 : vector<1x128xf32> to vector<8x128xf32>
      %61 = arith.addf %58, %60 : vector<8x128xf32>
      %c0_37 = arith.constant 0 : index
      %c0_38 = arith.constant 0 : index
      %62 = vector.load %arg6[%c0_37, %c0_38] : memref<8x128xf32, #tpu.memory_space<vmem>>, vector<8x128xf32>
      tpu.vector_store %arg6[%c0_37, %c0_38], %61 {strides = array<i32>} : memref<8x128xf32, #tpu.memory_space<vmem>>, vector<8x128xf32>,
    } else {
    }
    return
  }
  func.func @transform_0(%arg0: i32, %arg1: i32) -> (i32, i32, i32) {
    %c0_i32 = arith.constant 0 : i32
    %c0_i32_0 = arith.constant 0 : i32
    return %arg1, %arg0, %c0_i32 : i32, i32, i32
  }
  func.func @transform_1(%arg0: i32, %arg1: i32) -> (i32, i32) {
    %c0_i32 = arith.constant 0 : i32
    %c0_i32_0 = arith.constant 0 : i32
    %c0_i32_1 = arith.constant 0 : i32
    return %c0_i32, %c0_i32_0 : i32, i32
  }
  func.func @transform_2(%arg0: i32, %arg1: i32) -> (i32, i32) {
    %c0_i32 = arith.constant 0 : i32
    %c0_i32_0 = arith.constant 0 : i32
    %c0_i32_1 = arith.constant 0 : i32
    return %c0_i32, %c0_i32_0 : i32, i32
  }
  func.func @transform_3(%arg0: i32, %arg1: i32) -> (i32, i32) {
    %c0_i32 = arith.constant 0 : i32
    %c0_i32_0 = arith.constant 0 : i32
    %c0_i32_1 = arith.constant 0 : i32
    return %c0_i32, %c0_i32_0 : i32, i32
  }
  func.func @transform_4(%arg0: i32, %arg1: i32) -> (i32, i32) {
    %c0_i32 = arith.constant 0 : i32
    %c0_i32_0 = arith.constant 0 : i32
    return %arg0, %c0_i32 : i32, i32
  }
}

</mosaic_0001>

<bundles_post_ra>
// kernel: tpu_custom_call.1
= control target key start
LH: loop header
LB: loop body
LE: loop exit
PB: predicated region body
PF: predicated region fallthrough
CT: control target
= control target key end

     0   :  { %9 = vsyncpa [#allocation4], 0  ;;  %s1910_s0 = inlined_call_operand.hbm [shape: f32[8,8,128], index: 0, kind: input, shape index: {}]   ;;  %s1911_s1 = inlined_call_operand.hbm [shape: f32[128,128], index: 1, kind: input, shape index: {}]   ;;  %s1912_s2 = inlined_call_operand.hbm [shape: f32[128,128], index: 2, kind: input, shape index: {}]   ;;  %s1913_s3 = inlined_call_operand.hbm [shape: f32[1,128], index: 3, kind: input, shape index: {}]   ;;  %s1914_s4 = inlined_call_operand.hbm [shape: f32[8,128], index: 4, kind: output, shape index: {}]  }
   0x1   :  { %10 = vsyncpa [#allocation7], 0 }
   0x2   :  { %11 = vsyncpa [#allocation10], 0 }
   0x3   :  { %12 = vsyncpa [#allocation5], 0  ;;  %s1628_s15 = smov [#allocation6]   ;;  %s1629_s17 = smov [#allocation3]  }
   0x4   :  { %s30_s16 = sshll.u32 %s1628_s15, 4  ;;  %s18_s18 = sshll.u32 %s1629_s17, 4  ;;  %s31_s16 = int_to_ptr.vmem [resolvable:$true] %s30_s16  ;;  %s1663_s18 = int_to_ptr.vmem [resolvable:$true] %s18_s18 }
   0x5   :  { %s1510_s21 = scalar_lea.hbm %s1911_s1, 2048 }
   0x6   :  { %p1511_p0 = scmp.ne.s32.totalorder %s1911_s1, %s1510_s21  ;;  %p1514_p1 = scmp.lt.u32.totalorder %s1510_s21, %s1911_s1 }
   0x8   :  { %p1516_p2 = pnand %p1514_p1, %p1511_p0 }
   0xa   :  { %1519 = shalt.err (!%p1516_p2)
}
   0xb   :  { %s1520_s26 = scalar_lea.vmem %s31_s16, 2048  ;;  %p1525_p4 = scmp.lt.s32.totalorder %s31_s16, %s31_s16 }
   0xc   :  { %p1521_p3 = scmp.ne.s32.totalorder %s31_s16, %s1520_s26  ;;  %p1526_p5 = scmp.lt.s32.totalorder %s1520_s26, %s1520_s26 }
   0xe   :  { %p1527_p6 = por %p1526_p5, %p1525_p4 }
  0x10   :  { %p1528_p7 = pnand %p1527_p6, %p1521_p3 }
  0x12   :  { %1531 = shalt.err (!%p1528_p7)
}
  0x13   :  { %s1630_s27 = smov 128   ;;  %s1631_s28 = smov 8  }
  0x14   :  { %36 = dma.hbm_to_vmem [thread:$0]  %s1911_s1, 2048, %s31_s16, [#allocation7], %s1630_s27, %s1630_s27, %s1631_s28  }
  0x15   :  { %s1532_s7 = scalar_lea.hbm %s1910_s0, 1024 }
  0x16   :  { %p1533_p8 = scmp.ne.s32.totalorder %s1910_s0, %s1532_s7  ;;  %p1536_p9 = scmp.lt.u32.totalorder %s1532_s7, %s1910_s0 }
  0x18   :  { %p1538_p10 = pnand %p1536_p9, %p1533_p8 }
  0x1a   :  { %1541 = shalt.err (!%p1538_p10)
}
  0x1b   :  { %s1542_s12 = scalar_lea.vmem %s1663_s18, 1024  ;;  %p1547_p12 = scmp.lt.s32.totalorder %s1663_s18, %s1663_s18 }
  0x1c   :  { %p1543_p11 = scmp.ne.s32.totalorder %s1663_s18, %s1542_s12  ;;  %p1548_p13 = scmp.lt.s32.totalorder %s1542_s12, %s1542_s12 }
  0x1e   :  { %p1549_p0 = por %p1548_p13, %p1547_p12 }
  0x20   :  { %p1550_p1 = pnand %p1549_p0, %p1543_p11 }
  0x22   :  { %1553 = shalt.err (!%p1550_p1)
}
  0x23   :  { %24 = dma.hbm_to_vmem [thread:$0]  %s1910_s0, 1024, %s1663_s18, [#allocation4], %s1630_s27, %s1630_s27, %s1631_s28  }
  0x24   :  { %s1632_s14 = smov [#allocation8]   ;;  %s1633_s16 = smov [#allocation9]  }
  0x25   :  { %s42_s15 = sshll.u32 %s1632_s14, 4  ;;  %s55_s17 = sshll.u32 %s1633_s16, 4  ;;  %s43_s15 = int_to_ptr.vmem [resolvable:$true] %s42_s15  ;;  %s56_s17 = int_to_ptr.vmem [resolvable:$true] %s55_s17 }
  0x26   :  { %s1554_s21 = scalar_lea.hbm %s1912_s2, 2048 }
  0x27   :  { %p1555_p2 = scmp.ne.s32.totalorder %s1912_s2, %s1554_s21  ;;  %p1558_p3 = scmp.lt.u32.totalorder %s1554_s21, %s1912_s2 }
  0x29   :  { %p1560_p4 = pnand %p1558_p3, %p1555_p2 }
  0x2b   :  { %1563 = shalt.err (!%p1560_p4)
}
  0x2c   :  { %s1564_s0 = scalar_lea.vmem %s43_s15, 2048  ;;  %p1569_p6 = scmp.lt.s32.totalorder %s43_s15, %s43_s15 }
  0x2d   :  { %p1565_p5 = scmp.ne.s32.totalorder %s43_s15, %s1564_s0  ;;  %p1570_p7 = scmp.lt.s32.totalorder %s1564_s0, %s1564_s0 }
  0x2f   :  { %p1571_p8 = por %p1570_p7, %p1569_p6 }
  0x31   :  { %p1572_p9 = pnand %p1571_p8, %p1565_p5 }
  0x33   :  { %1575 = shalt.err (!%p1572_p9)
}
  0x34   :  { %48 = dma.hbm_to_vmem [thread:$0]  %s1912_s2, 2048, %s43_s15, [#allocation7], %s1630_s27, %s1630_s27, %s1631_s28  }
  0x35   :  { %s1576_s5 = scalar_lea.hbm %s1913_s3, 16 }
  0x36   :  { %p1577_p10 = scmp.ne.s32.totalorder %s1913_s3, %s1576_s5  ;;  %p1580_p11 = scmp.lt.u32.totalorder %s1576_s5, %s1913_s3 }
  0x38   :  { %p1582_p12 = pnand %p1580_p11, %p1577_p10 }
  0x3a   :  { %1585 = shalt.err (!%p1582_p12)
}
  0x3b   :  { %s1586_s10 = scalar_lea.vmem %s56_s17, 16  ;;  %s1590_s11 = scalar_lea.vmem %s56_s17, 32 }
  0x3c   :  { %p1587_p13 = scmp.ne.s32.totalorder %s56_s17, %s1586_s10  ;;  %p1591_p0 = scmp.lt.s32.totalorder %s56_s17, %s56_s17 }
  0x3d   :  { %p1592_p1 = scmp.lt.s32.totalorder %s1590_s11, %s1586_s10 }
  0x3f   :  { %p1593_p2 = por %p1592_p1, %p1591_p0 }
  0x41   :  { %p1594_p3 = pnand %p1593_p2, %p1587_p13 }
  0x43   :  { %1597 = shalt.err (!%p1594_p3)
}
  0x44   :  { %58 = dma.hbm_to_vmem [thread:$0]  %s1913_s3, 16, %s56_s17, [#allocation10]  }
  0x45   :  { %1620 = dma.done.wait [#allocation4], 1024  }
  0x46   :  { %1621 = vsyncadd [#allocation4], 4294966272 }
  0x47   :  { %1622 = dma.done.wait [#allocation7], 4096  }
  0x48   :  { %1623 = vsyncadd [#allocation7], 4294963200 }
  0x49   :  { %1624 = dma.done.wait [#allocation10], 16  }
  0x4a   :  { %1625 = vsyncadd [#allocation10], 4294967280  ;;  %v1634_v0 = vmov 0.0|0.0   ;;  %vm1635_vm0 = vmmov 0   ;;  %v1636_v1 = vmov 0.0   ;;  %v76_v2 = vld [vmem:[#allocation6] sm:$0xff] }
  0x4b   :  { %1268 = vmatprep.subr.bf16.mxu0 %v1634_v0  ;;  %985 = vmatprep.mubr.msk.f32.mxu0 %vm1635_vm0, %v1636_v1  ;;  %v77_v3 = vld [vmem:[#allocation6 + $0x8] sm:$0xff]  ;;  %v78_v4 = vld [vmem:[#allocation6 + $0x10] sm:$0xff]  ;;  %v79_v6 = vld [vmem:[#allocation6 + $0x18] sm:$0xff]  ;;  %s1637_s3 = smov [#allocation11]  }
  0x4c   :  { %1292 = vmatprep.subr.bf16.mxu1 %v1634_v0  ;;  %1020 = vmatprep.mubr.msk.f32.mxu1 %vm1635_vm0, %v1636_v1  ;;  %v1733_v5 = vpack.c.bf16 %v77_v3, %v76_v2  ;;  %v1736_v7 = vpack.c.bf16 %v79_v6, %v78_v4  ;;  %v80_v8 = vld [vmem:[#allocation6 + $0x20] sm:$0xff]  ;;  %v81_v9 = vld [vmem:[#allocation6 + $0x28] sm:$0xff]  ;;  %v82_v11 = vld [vmem:[#allocation6 + $0x30] sm:$0xff]  ;;  %s788_s28 = sshll.u32 %s1637_s3, 4  ;;  %s789_s28 = int_to_ptr.vmem [resolvable:$true] %s788_s28 }
  0x4d   :  { %v1742_v10 = vpack.c.bf16 %v81_v9, %v80_v8  ;;  %v83_v12 = vld [vmem:[#allocation6 + $0x38] sm:$0xff]  ;;  %v84_v14 = vld [vmem:[#allocation6 + $0x40] sm:$0xff]  ;;  %v85_v15 = vld [vmem:[#allocation6 + $0x48] sm:$0xff]  ;;  %s1598_s12 = scalar_lea.vmem %s789_s28, 128  ;;  %p1603_p5 = scmp.lt.s32.totalorder %s789_s28, %s789_s28 }
  0x4e   :  { %1270 = vmatpush3.bf16.msra.mxu0 %v1733_v5  ;;  %1294 = vmatpush3.bf16.msra.mxu1 %v1733_v5  ;;  %v1748_v13 = vpack.c.bf16 %v83_v12, %v82_v11  ;;  %v1754_v16 = vpack.c.bf16 %v85_v15, %v84_v14  ;;  %v86_v17 = vld [vmem:[#allocation6 + $0x50] sm:$0xff]  ;;  %v87_v18 = vld [vmem:[#allocation6 + $0x58] sm:$0xff]  ;;  %v88_v20 = vld [vmem:[#allocation6 + $0x60] sm:$0xff]  ;;  %p1599_p4 = scmp.ne.s32.totalorder %s789_s28, %s1598_s12  ;;  %p1604_p6 = scmp.lt.s32.totalorder %s1598_s12, %s1598_s12 }
  0x4f   :  { %1271 = vmatprep.subr.bf16.mxu0 %v1634_v0  ;;  %1295 = vmatprep.subr.bf16.mxu1 %v1634_v0  ;;  %v1760_v19 = vpack.c.bf16 %v87_v18, %v86_v17  ;;  %v89_v21 = vld [vmem:[#allocation6 + $0x68] sm:$0xff]  ;;  %v90_v23 = vld [vmem:[#allocation6 + $0x70] sm:$0xff]  ;;  %v91_v24 = vld [vmem:[#allocation6 + $0x78] sm:$0xff] }
  0x50   :  { %v1766_v22 = vpack.c.bf16 %v89_v21, %v88_v20  ;;  %v1772_v25 = vpack.c.bf16 %v91_v24, %v90_v23  ;;  %v93_v26 = vld [vmem:[#allocation3] sm:$0xff]  ;;  %v167_v31 = vld [vmem:[#allocation3 + $0x8] sm:$0xff]  ;;  %v241_v36 = vld [vmem:[#allocation3 + $0x10] sm:$0xff]  ;;  %p1605_p7 = por %p1604_p6, %p1603_p5 }
  0x51   :  { %v315_v41 = vld [vmem:[#allocation3 + $0x18] sm:$0xff]  ;;  %v389_v46 = vld [vmem:[#allocation3 + $0x20] sm:$0xff]  ;;  %v463_v51 = vld [vmem:[#allocation3 + $0x28] sm:$0xff] }
  0x52   :  { %1273 = vmatpush3.bf16.msra.mxu0 %v1736_v7  ;;  %1297 = vmatpush3.bf16.msra.mxu1 %v1736_v7  ;;  %v688_v56 = vld [vmem:[#allocation8] sm:$0xff]  ;;  %v689_v57 = vld [vmem:[#allocation8 + $0x8] sm:$0xff]  ;;  %v690_v58 = vld [vmem:[#allocation8 + $0x10] sm:$0xff]  ;;  %p1606_p8 = pnand %p1605_p7, %p1599_p4 }
  0x53   :  { %1274 = vmatprep.subr.bf16.mxu0 %v1634_v0  ;;  %1298 = vmatprep.subr.bf16.mxu1 %v1634_v0  ;;  %v1461_v59 = vpack.c.bf16 %v689_v57, %v688_v56  ;;  %v691_v60 = vld [vmem:[#allocation8 + $0x18] sm:$0xff]  ;;  %v692_v62 = vld [vmem:[#allocation8 + $0x20] sm:$0xff]  ;;  %v693_v63 = vld [vmem:[#allocation8 + $0x28] sm:$0xff] }
  0x54   :  { %v1464_v61 = vpack.c.bf16 %v691_v60, %v690_v58  ;;  %v1467_v2 = vpack.c.bf16 %v693_v63, %v692_v62  ;;  %v694_v3 = vld [vmem:[#allocation8 + $0x30] sm:$0xff]  ;;  %v695_v4 = vld [vmem:[#allocation8 + $0x38] sm:$0xff]  ;;  %v697_v6 = vld [vmem:[#allocation8 + $0x48] sm:$0xff] }
  0x55   :  { %v537_v8 = vld [vmem:[#allocation3 + $0x30] sm:$0xff]  ;;  %v699_v14 = vld [vmem:[#allocation8 + $0x58] sm:$0xff]  ;;  %v701_v17 = vld [vmem:[#allocation8 + $0x68] sm:$0xff] }
  0x56   :  { %1276 = vmatpush3.bf16.msra.mxu0 %v1742_v10  ;;  %1300 = vmatpush3.bf16.msra.mxu1 %v1742_v10  ;;  %v703_v20 = vld [vmem:[#allocation8 + $0x78] sm:$0xff] }
  0x57   :  { %1277 = vmatprep.subr.bf16.mxu0 %v1634_v0  ;;  %1301 = vmatprep.subr.bf16.mxu1 %v1634_v0 }
  0x5a   :  { %1279 = vmatpush3.bf16.msra.mxu0 %v1748_v13  ;;  %1303 = vmatpush3.bf16.msra.mxu1 %v1748_v13 }
  0x5b   :  { %1280 = vmatprep.subr.bf16.mxu0 %v1634_v0  ;;  %1304 = vmatprep.subr.bf16.mxu1 %v1634_v0 }
  0x5e   :  { %1282 = vmatpush3.bf16.msra.mxu0 %v1754_v16  ;;  %1306 = vmatpush3.bf16.msra.mxu1 %v1754_v16 }
  0x5f   :  { %1283 = vmatprep.subr.bf16.mxu0 %v1634_v0  ;;  %1307 = vmatprep.subr.bf16.mxu1 %v1634_v0 }
  0x62   :  { %1285 = vmatpush3.bf16.msra.mxu0 %v1760_v19  ;;  %1309 = vmatpush3.bf16.msra.mxu1 %v1760_v19 }
  0x63   :  { %1286 = vmatprep.subr.bf16.mxu0 %v1634_v0  ;;  %1310 = vmatprep.subr.bf16.mxu1 %v1634_v0 }
  0x66   :  { %1288 = vmatpush3.bf16.msra.mxu0 %v1766_v22  ;;  %1312 = vmatpush3.bf16.msra.mxu1 %v1766_v22 }
  0x67   :  { %1289 = vmatprep.subr.bf16.mxu0 %v1634_v0  ;;  %1313 = vmatprep.subr.bf16.mxu1 %v1634_v0 }
  0x6a   :  { %1291 = vmatpush3.bf16.msra.mxu0 %v1772_v25  ;;  %1315 = vmatpush3.bf16.msra.mxu1 %v1772_v25 }
  0x6b   :  { %1316 = vmatprep.subr.bf16.mxu0 %v1634_v0  ;;  %1340 = vmatprep.subr.bf16.mxu1 %v1634_v0 }
  0x6d   :  { %986 = vmatmul.mubr.f32.vlgmr.msra.gmra.mrb[0].mxu0 %v1636_v1 }
  0x6e   :  { %1318 = vmatpush3.bf16.msra.mxu0 %v1733_v5  ;;  %1055 = vmatprep.mubr.msk.f32.mxu0 %vm1635_vm0, %v1636_v1 }
  0x6f   :  { %1319 = vmatprep.subr.bf16.mxu0 %v1634_v0 }
  0x72   :  { %1321 = vmatpush3.bf16.msra.mxu0 %v1736_v7 }
  0x73   :  { %1322 = vmatprep.subr.bf16.mxu0 %v1634_v0 }
  0x76   :  { %1324 = vmatpush3.bf16.msra.mxu0 %v1742_v10 }
  0x77   :  { %1325 = vmatprep.subr.bf16.mxu0 %v1634_v0 }
  0x7a   :  { %1327 = vmatpush3.bf16.msra.mxu0 %v1748_v13 }
  0x7b   :  { %1328 = vmatprep.subr.bf16.mxu0 %v1634_v0 }
  0x7e   :  { %1330 = vmatpush3.bf16.msra.mxu0 %v1754_v16 }
  0x7f   :  { %1331 = vmatprep.subr.bf16.mxu0 %v1634_v0 }
  0x82   :  { %1333 = vmatpush3.bf16.msra.mxu0 %v1760_v19 }
  0x83   :  { %1334 = vmatprep.subr.bf16.mxu0 %v1634_v0 }
  0x86   :  { %1336 = vmatpush3.bf16.msra.mxu0 %v1766_v22 }
  0x87   :  { %1337 = vmatprep.subr.bf16.mxu0 %v1634_v0 }
  0x8a   :  { %1339 = vmatpush3.bf16.msra.mxu0 %v1772_v25 }
  0x8b   :  { %1364 = vmatprep.subr.bf16.mxu0 %v1634_v0 }
 0x140   :  { %v160_v27 = vpop.f32.mrb[0].mxu0 }
 0x141   :  { %v164_v28 = vadd.f32 %v160_v27, %v93_v26  ;;  %v987_v29 = vpop.f32.mrb[1].mxu0  ;;  %v799_v27 = vld [vmem:[#allocation9] ss:$0 sm:$0xff] }
 0x143   :  { %1494 = vtanh.f32 %v164_v28 }
 0x14d   :  { %v1495_v30 = vpop.eup %1494 }
 0x14e   :  { %1021 = vmatmul.mubr.f32.vlgmr.msra.gmra.mrb[0].mxu1 %v1495_v30 }
 0x14f   :  { %1342 = vmatpush3.bf16.msra.mxu1 %v1733_v5  ;;  %1090 = vmatprep.mubr.msk.f32.mxu1 %vm1635_vm0, %v1636_v1 }
 0x150   :  { %1343 = vmatprep.subr.bf16.mxu1 %v1634_v0 }
 0x153   :  { %1345 = vmatpush3.bf16.msra.mxu1 %v1736_v7 }
 0x154   :  { %1346 = vmatprep.subr.bf16.mxu1 %v1634_v0 }
 0x157   :  { %1348 = vmatpush3.bf16.msra.mxu1 %v1742_v10 }
 0x158   :  { %1349 = vmatprep.subr.bf16.mxu1 %v1634_v0 }
 0x15b   :  { %1351 = vmatpush3.bf16.msra.mxu1 %v1748_v13 }
 0x15c   :  { %1352 = vmatprep.subr.bf16.mxu1 %v1634_v0 }
 0x15f   :  { %1354 = vmatpush3.bf16.msra.mxu1 %v1754_v16 }
 0x160   :  { %1355 = vmatprep.subr.bf16.mxu1 %v1634_v0 }
 0x163   :  { %1357 = vmatpush3.bf16.msra.mxu1 %v1760_v19 }
 0x164   :  { %1358 = vmatprep.subr.bf16.mxu1 %v1634_v0 }
 0x167   :  { %1360 = vmatpush3.bf16.msra.mxu1 %v1766_v22 }
 0x168   :  { %1361 = vmatprep.subr.bf16.mxu1 %v1634_v0 }
 0x16b   :  { %1363 = vmatpush3.bf16.msra.mxu1 %v1772_v25 }
 0x16c   :  { %1388 = vmatprep.subr.bf16.mxu1 %v1634_v0 }
 0x221   :  { %v234_v32 = vpop.f32.mrb[0].mxu1 }
 0x222   :  { %v238_v33 = vadd.f32 %v234_v32, %v167_v31  ;;  %v1022_v34 = vpop.f32.mrb[1].mxu1 }
 0x224   :  { %1496 = vtanh.f32 %v238_v33 }
 0x22e   :  { %v1497_v35 = vpop.eup %1496 }
 0x22f   :  { %1056 = vmatmul.mubr.f32.vlgmr.msra.gmra.mrb[2].mxu0 %v1497_v35 }
 0x230   :  { %1366 = vmatpush3.bf16.msra.mxu0 %v1733_v5  ;;  %1125 = vmatprep.mubr.msk.f32.mxu0 %vm1635_vm0, %v1636_v1 }
 0x231   :  { %1367 = vmatprep.subr.bf16.mxu0 %v1634_v0 }
 0x234   :  { %1369 = vmatpush3.bf16.msra.mxu0 %v1736_v7 }
 0x235   :  { %1370 = vmatprep.subr.bf16.mxu0 %v1634_v0 }
 0x238   :  { %1372 = vmatpush3.bf16.msra.mxu0 %v1742_v10 }
 0x239   :  { %1373 = vmatprep.subr.bf16.mxu0 %v1634_v0 }
 0x23c   :  { %1375 = vmatpush3.bf16.msra.mxu0 %v1748_v13 }
 0x23d   :  { %1376 = vmatprep.subr.bf16.mxu0 %v1634_v0 }
 0x240   :  { %1378 = vmatpush3.bf16.msra.mxu0 %v1754_v16 }
 0x241   :  { %1379 = vmatprep.subr.bf16.mxu0 %v1634_v0 }
 0x244   :  { %1381 = vmatpush3.bf16.msra.mxu0 %v1760_v19 }
 0x245   :  { %1382 = vmatprep.subr.bf16.mxu0 %v1634_v0 }
 0x248   :  { %1384 = vmatpush3.bf16.msra.mxu0 %v1766_v22 }
 0x249   :  { %1385 = vmatprep.subr.bf16.mxu0 %v1634_v0 }
 0x24c   :  { %1387 = vmatpush3.bf16.msra.mxu0 %v1772_v25 }
 0x24d   :  { %1412 = vmatprep.subr.bf16.mxu0 %v1634_v0 }
 0x302   :  { %v308_v37 = vpop.f32.mrb[2].mxu0 }
 0x303   :  { %v312_v38 = vadd.f32 %v308_v37, %v241_v36  ;;  %v1057_v39 = vpop.f32.mrb[3].mxu0 }
 0x305   :  { %1498 = vtanh.f32 %v312_v38 }
 0x30f   :  { %v1499_v40 = vpop.eup %1498 }
 0x310   :  { %1091 = vmatmul.mubr.f32.vlgmr.msra.gmra.mrb[2].mxu1 %v1499_v40 }
 0x311   :  { %1390 = vmatpush3.bf16.msra.mxu1 %v1733_v5  ;;  %1160 = vmatprep.mubr.msk.f32.mxu1 %vm1635_vm0, %v1636_v1 }
 0x312   :  { %1391 = vmatprep.subr.bf16.mxu1 %v1634_v0 }
 0x315   :  { %1393 = vmatpush3.bf16.msra.mxu1 %v1736_v7 }
 0x316   :  { %1394 = vmatprep.subr.bf16.mxu1 %v1634_v0 }
 0x319   :  { %1396 = vmatpush3.bf16.msra.mxu1 %v1742_v10 }
 0x31a   :  { %1397 = vmatprep.subr.bf16.mxu1 %v1634_v0 }
 0x31d   :  { %1399 = vmatpush3.bf16.msra.mxu1 %v1748_v13 }
 0x31e   :  { %1400 = vmatprep.subr.bf16.mxu1 %v1634_v0 }
 0x321   :  { %1402 = vmatpush3.bf16.msra.mxu1 %v1754_v16 }
 0x322   :  { %1403 = vmatprep.subr.bf16.mxu1 %v1634_v0 }
 0x325   :  { %1405 = vmatpush3.bf16.msra.mxu1 %v1760_v19 }
 0x326   :  { %1406 = vmatprep.subr.bf16.mxu1 %v1634_v0 }
 0x329   :  { %1408 = vmatpush3.bf16.msra.mxu1 %v1766_v22 }
 0x32a   :  { %1409 = vmatprep.subr.bf16.mxu1 %v1634_v0 }
 0x32d   :  { %1411 = vmatpush3.bf16.msra.mxu1 %v1772_v25 }
 0x32e   :  { %1436 = vmatprep.subr.bf16.mxu1 %v1634_v0 }
 0x3e3   :  { %v382_v42 = vpop.f32.mrb[2].mxu1 }
 0x3e4   :  { %v386_v43 = vadd.f32 %v382_v42, %v315_v41  ;;  %v1092_v44 = vpop.f32.mrb[3].mxu1 }
 0x3e6   :  { %1500 = vtanh.f32 %v386_v43 }
 0x3f0   :  { %v1501_v45 = vpop.eup %1500 }
 0x3f1   :  { %1126 = vmatmul.mubr.f32.vlgmr.msra.gmra.mrb[4].mxu0 %v1501_v45 }
 0x3f2   :  { %1414 = vmatpush3.bf16.msra.mxu0 %v1733_v5  ;;  %1195 = vmatprep.mubr.msk.f32.mxu0 %vm1635_vm0, %v1636_v1 }
 0x3f3   :  { %1415 = vmatprep.subr.bf16.mxu0 %v1634_v0 }
 0x3f6   :  { %1417 = vmatpush3.bf16.msra.mxu0 %v1736_v7 }
 0x3f7   :  { %1418 = vmatprep.subr.bf16.mxu0 %v1634_v0 }
 0x3fa   :  { %1420 = vmatpush3.bf16.msra.mxu0 %v1742_v10 }
 0x3fb   :  { %1421 = vmatprep.subr.bf16.mxu0 %v1634_v0 }
 0x3fe   :  { %1423 = vmatpush3.bf16.msra.mxu0 %v1748_v13 }
 0x3ff   :  { %1424 = vmatprep.subr.bf16.mxu0 %v1634_v0 }
 0x402   :  { %1426 = vmatpush3.bf16.msra.mxu0 %v1754_v16 }
 0x403   :  { %1427 = vmatprep.subr.bf16.mxu0 %v1634_v0 }
 0x406   :  { %1429 = vmatpush3.bf16.msra.mxu0 %v1760_v19 }
 0x407   :  { %1430 = vmatprep.subr.bf16.mxu0 %v1634_v0 }
 0x40a   :  { %1432 = vmatpush3.bf16.msra.mxu0 %v1766_v22 }
 0x40b   :  { %1433 = vmatprep.subr.bf16.mxu0 %v1634_v0 }
 0x40e   :  { %1435 = vmatpush3.bf16.msra.mxu0 %v1772_v25 }
 0x40f   :  { %1460 = vmatprep.subr.bf16.mxu0 %v1634_v0 }
 0x4c4   :  { %v456_v47 = vpop.f32.mrb[4].mxu0 }
 0x4c5   :  { %v460_v48 = vadd.f32 %v456_v47, %v389_v46  ;;  %v1127_v49 = vpop.f32.mrb[5].mxu0 }
 0x4c7   :  { %1502 = vtanh.f32 %v460_v48 }
 0x4d1   :  { %v1503_v50 = vpop.eup %1502 }
 0x4d2   :  { %1161 = vmatmul.mubr.f32.vlgmr.msra.gmra.mrb[4].mxu1 %v1503_v50 }
 0x4d3   :  { %1438 = vmatpush3.bf16.msra.mxu1 %v1733_v5  ;;  %1230 = vmatprep.mubr.msk.f32.mxu1 %vm1635_vm0, %v1636_v1  ;;  %v1470_v5 = vpack.c.bf16 %v695_v4, %v694_v3 }
 0x4d4   :  { %1439 = vmatprep.subr.bf16.mxu1 %v1634_v0 }
 0x4d7   :  { %1441 = vmatpush3.bf16.msra.mxu1 %v1736_v7 }
 0x4d8   :  { %1442 = vmatprep.subr.bf16.mxu1 %v1634_v0 }
 0x4db   :  { %1444 = vmatpush3.bf16.msra.mxu1 %v1742_v10 }
 0x4dc   :  { %1445 = vmatprep.subr.bf16.mxu1 %v1634_v0 }
 0x4df   :  { %1447 = vmatpush3.bf16.msra.mxu1 %v1748_v13  ;;  %v698_v13 = vld [vmem:[#allocation8 + $0x50] sm:$0xff] }
 0x4e0   :  { %1448 = vmatprep.subr.bf16.mxu1 %v1634_v0  ;;  %v1476_v15 = vpack.c.bf16 %v699_v14, %v698_v13 }
 0x4e3   :  { %1450 = vmatpush3.bf16.msra.mxu1 %v1754_v16  ;;  %v700_v16 = vld [vmem:[#allocation8 + $0x60] sm:$0xff] }
 0x4e4   :  { %1451 = vmatprep.subr.bf16.mxu1 %v1634_v0  ;;  %v1479_v18 = vpack.c.bf16 %v701_v17, %v700_v16 }
 0x4e7   :  { %1453 = vmatpush3.bf16.msra.mxu1 %v1760_v19  ;;  %v702_v19 = vld [vmem:[#allocation8 + $0x70] sm:$0xff] }
 0x4e8   :  { %1454 = vmatprep.subr.bf16.mxu1 %v1634_v0  ;;  %v1482_v21 = vpack.c.bf16 %v703_v20, %v702_v19 }
 0x4eb   :  { %1456 = vmatpush3.bf16.msra.mxu1 %v1766_v22  ;;  %v611_v22 = vld [vmem:[#allocation3 + $0x38] sm:$0xff] }
 0x4ec   :  { %1457 = vmatprep.subr.bf16.mxu1 %v1634_v0 }
 0x4ef   :  { %1459 = vmatpush3.bf16.msra.mxu1 %v1772_v25 }
 0x5a5   :  { %v530_v52 = vpop.f32.mrb[4].mxu1 }
 0x5a6   :  { %v534_v53 = vadd.f32 %v530_v52, %v463_v51  ;;  %v1162_v54 = vpop.f32.mrb[5].mxu1 }
 0x5a8   :  { %1504 = vtanh.f32 %v534_v53 }
 0x5b2   :  { %v1505_v55 = vpop.eup %1504 }
 0x5b3   :  { %1196 = vmatmul.mubr.f32.vlgmr.msra.gmra.mrb[6].mxu0 %v1505_v55 }
 0x5b4   :  { %1265 = vmatprep.mubr.msk.f32.mxu0 %vm1635_vm0, %v1636_v1  ;;  %1462 = vmatpush3.bf16.msra.mxu0 %v1461_v59  ;;  %v696_v1 = vld [vmem:[#allocation8 + $0x40] sm:$0xff] }
 0x5b5   :  { %1463 = vmatprep.subr.bf16.mxu0 %v1634_v0  ;;  %v1473_v7 = vpack.c.bf16 %v697_v6, %v696_v1 }
 0x5b8   :  { %1465 = vmatpush3.bf16.msra.mxu0 %v1464_v61 }
 0x5b9   :  { %1466 = vmatprep.subr.bf16.mxu0 %v1634_v0 }
 0x5bc   :  { %1468 = vmatpush3.bf16.msra.mxu0 %v1467_v2 }
 0x5bd   :  { %1469 = vmatprep.subr.bf16.mxu0 %v1634_v0 }
 0x5c0   :  { %1471 = vmatpush3.bf16.msra.mxu0 %v1470_v5 }
 0x5c1   :  { %1472 = vmatprep.subr.bf16.mxu0 %v1634_v0 }
 0x5c4   :  { %1474 = vmatpush3.bf16.msra.mxu0 %v1473_v7 }
 0x5c5   :  { %1475 = vmatprep.subr.bf16.mxu0 %v1634_v0 }
 0x5c8   :  { %1477 = vmatpush3.bf16.msra.mxu0 %v1476_v15 }
 0x5c9   :  { %1478 = vmatprep.subr.bf16.mxu0 %v1634_v0 }
 0x5cc   :  { %1480 = vmatpush3.bf16.msra.mxu0 %v1479_v18 }
 0x5cd   :  { %1481 = vmatprep.subr.bf16.mxu0 %v1634_v0 }
 0x5d0   :  { %1483 = vmatpush3.bf16.msra.mxu0 %v1482_v21 }
 0x686   :  { %v604_v9 = vpop.f32.mrb[6].mxu0 }
 0x687   :  { %v608_v10 = vadd.f32 %v604_v9, %v537_v8  ;;  %v1197_v11 = vpop.f32.mrb[7].mxu0 }
 0x689   :  { %1506 = vtanh.f32 %v608_v10 }
 0x693   :  { %v1507_v12 = vpop.eup %1506 }
 0x694   :  { %1231 = vmatmul.mubr.f32.vlgmr.msra.gmra.mrb[6].mxu1 %v1507_v12 }
 0x767   :  { %v678_v23 = vpop.f32.mrb[6].mxu1 }
 0x768   :  { %v682_v24 = vadd.f32 %v678_v23, %v611_v22  ;;  %v1232_v25 = vpop.f32.mrb[7].mxu1 }
 0x76a   :  { %1508 = vtanh.f32 %v682_v24 }
 0x774   :  { %v1509_v26 = vpop.eup %1508 }
 0x775   :  { %1266 = vmatmul.mubr.f32.vlgmr.msra.gmra.mrb[8].mxu0 %v1509_v26 }
 0x848   :  { %v777_v28 = vpop.f32.mrb[8].mxu0 }
 0x849   :  { %v778_v29 = vadd.f32 %v799_v27, %v777_v28  ;;  %v1267_v30 = vpop.f32.mrb[9].mxu0 }
 0x84b   :  { %781 = vst [vmem:[#allocation11] sm:$0xff] %v778_v29 }
 0x84c   :  { %1609 = shalt.err (!%p1606_p8)
}
 0x84d   :  { %s1610_s14 = scalar_lea.hbm %s1914_s4, 128 }
 0x84e   :  { %p1611_p9 = scmp.ne.s32.totalorder %s1914_s4, %s1610_s14  ;;  %p1614_p10 = scmp.lt.u32.totalorder %s1610_s14, %s1914_s4 }
 0x850   :  { %p1616_p11 = pnand %p1614_p10, %p1611_p9 }
 0x852   :  { %1619 = shalt.err (!%p1616_p11)
}
 0x853   :  { %791 = dma.vmem_to_hbm [thread:$0]  %s789_s28, 128, %s1914_s4, [#allocation5]  }
 0x854   :  { %1626 = dma.done.wait [#allocation5], 128  }
 0x855   :  { %1627 = vsyncadd [#allocation5], 4294967168 }
 0x856   :  { %795 = vsyncpa [#allocation4], 1 }
 0x857   :  { %796 = vsyncpa [#allocation7], 1 }
 0x858   :  { %797 = vsyncpa [#allocation10], 1 }
 0x859   :  { %798 = vsyncpa [#allocation5], 1 }

// kernel: tpu_custom_call.1
= control target key start
LH: loop header
LB: loop body
LE: loop exit
PB: predicated region body
PF: predicated region fallthrough
CT: control target
= control target key end

     0   :  { %9 = vsyncpa [#allocation4], 0  ;;  %s1910_s0 = inlined_call_operand.hbm [shape: f32[8,8,128], index: 0, kind: input, shape index: {}]   ;;  %s1911_s1 = inlined_call_operand.hbm [shape: f32[128,128], index: 1, kind: input, shape index: {}]   ;;  %s1912_s2 = inlined_call_operand.hbm [shape: f32[128,128], index: 2, kind: input, shape index: {}]   ;;  %s1913_s3 = inlined_call_operand.hbm [shape: f32[1,128], index: 3, kind: input, shape index: {}]   ;;  %s1914_s4 = inlined_call_operand.hbm [shape: f32[8,128], index: 4, kind: output, shape index: {}]  }
   0x1   :  { %10 = vsyncpa [#allocation7], 0 }
   0x2   :  { %11 = vsyncpa [#allocation10], 0 }
   0x3   :  { %12 = vsyncpa [#allocation5], 0  ;;  %s1628_s15 = smov [#allocation6]   ;;  %s1629_s17 = smov [#allocation3]  }
   0x4   :  { %s30_s16 = sshll.u32 %s1628_s15, 4  ;;  %s18_s18 = sshll.u32 %s1629_s17, 4  ;;  %s31_s16 = int_to_ptr.vmem [resolvable:$true] %s30_s16  ;;  %s1663_s18 = int_to_ptr.vmem [resolvable:$true] %s18_s18 }
   0x5   :  { %s1510_s21 = scalar_lea.hbm %s1911_s1, 2048 }
   0x6   :  { %p1511_p0 = scmp.ne.s32.totalorder %s1911_s1, %s1510_s21  ;;  %p1514_p1 = scmp.lt.u32.totalorder %s1510_s21, %s1911_s1 }
   0x8   :  { %p1516_p2 = pnand %p1514_p1, %p1511_p0 }
   0xa   :  { %1519 = shalt.err (!%p1516_p2)
}
   0xb   :  { %s1520_s26 = scalar_lea.vmem %s31_s16, 2048  ;;  %p1525_p4 = scmp.lt.s32.totalorder %s31_s16, %s31_s16 }
   0xc   :  { %p1521_p3 = scmp.ne.s32.totalorder %s31_s16, %s1520_s26  ;;  %p1526_p5 = scmp.lt.s32.totalorder %s1520_s26, %s1520_s26 }
   0xe   :  { %p1527_p6 = por %p1526_p5, %p1525_p4 }
  0x10   :  { %p1528_p7 = pnand %p1527_p6, %p1521_p3 }
  0x12   :  { %1531 = shalt.err (!%p1528_p7)
}
  0x13   :  { %s1630_s27 = smov 128   ;;  %s1631_s28 = smov 8  }
  0x14   :  { %36 = dma.hbm_to_vmem [thread:$0]  %s1911_s1, 2048, %s31_s16, [#allocation7], %s1630_s27, %s1630_s27, %s1631_s28  }
  0x15   :  { %s1532_s7 = scalar_lea.hbm %s1910_s0, 1024 }
  0x16   :  { %p1533_p8 = scmp.ne.s32.totalorder %s1910_s0, %s1532_s7  ;;  %p1536_p9 = scmp.lt.u32.totalorder %s1532_s7, %s1910_s0 }
  0x18   :  { %p1538_p10 = pnand %p1536_p9, %p1533_p8 }
  0x1a   :  { %1541 = shalt.err (!%p1538_p10)
}
  0x1b   :  { %s1542_s12 = scalar_lea.vmem %s1663_s18, 1024  ;;  %p1547_p12 = scmp.lt.s32.totalorder %s1663_s18, %s1663_s18 }
  0x1c   :  { %p1543_p11 = scmp.ne.s32.totalorder %s1663_s18, %s1542_s12  ;;  %p1548_p13 = scmp.lt.s32.totalorder %s1542_s12, %s1542_s12 }
  0x1e   :  { %p1549_p0 = por %p1548_p13, %p1547_p12 }
  0x20   :  { %p1550_p1 = pnand %p1549_p0, %p1543_p11 }
  0x22   :  { %1553 = shalt.err (!%p1550_p1)
}
  0x23   :  { %24 = dma.hbm_to_vmem [thread:$0]  %s1910_s0, 1024, %s1663_s18, [#allocation4], %s1630_s27, %s1630_s27, %s1631_s28  }
  0x24   :  { %s1632_s14 = smov [#allocation8]   ;;  %s1633_s16 = smov [#allocation9]  }
  0x25   :  { %s42_s15 = sshll.u32 %s1632_s14, 4  ;;  %s55_s17 = sshll.u32 %s1633_s16, 4  ;;  %s43_s15 = int_to_ptr.vmem [resolvable:$true] %s42_s15  ;;  %s56_s17 = int_to_ptr.vmem [resolvable:$true] %s55_s17 }
  0x26   :  { %s1554_s21 = scalar_lea.hbm %s1912_s2, 2048 }
  0x27   :  { %p1555_p2 = scmp.ne.s32.totalorder %s1912_s2, %s1554_s21  ;;  %p1558_p3 = scmp.lt.u32.totalorder %s1554_s21, %s1912_s2 }
  0x29   :  { %p1560_p4 = pnand %p1558_p3, %p1555_p2 }
  0x2b   :  { %1563 = shalt.err (!%p1560_p4)
}
  0x2c   :  { %s1564_s0 = scalar_lea.vmem %s43_s15, 2048  ;;  %p1569_p6 = scmp.lt.s32.totalorder %s43_s15, %s43_s15 }
  0x2d   :  { %p1565_p5 = scmp.ne.s32.totalorder %s43_s15, %s1564_s0  ;;  %p1570_p7 = scmp.lt.s32.totalorder %s1564_s0, %s1564_s0 }
  0x2f   :  { %p1571_p8 = por %p1570_p7, %p1569_p6 }
  0x31   :  { %p1572_p9 = pnand %p1571_p8, %p1565_p5 }
  0x33   :  { %1575 = shalt.err (!%p1572_p9)
}
  0x34   :  { %48 = dma.hbm_to_vmem [thread:$0]  %s1912_s2, 2048, %s43_s15, [#allocation7], %s1630_s27, %s1630_s27, %s1631_s28  }
  0x35   :  { %s1576_s5 = scalar_lea.hbm %s1913_s3, 16 }
  0x36   :  { %p1577_p10 = scmp.ne.s32.totalorder %s1913_s3, %s1576_s5  ;;  %p1580_p11 = scmp.lt.u32.totalorder %s1576_s5, %s1913_s3 }
  0x38   :  { %p1582_p12 = pnand %p1580_p11, %p1577_p10 }
  0x3a   :  { %1585 = shalt.err (!%p1582_p12)
}
  0x3b   :  { %s1586_s10 = scalar_lea.vmem %s56_s17, 16  ;;  %s1590_s11 = scalar_lea.vmem %s56_s17, 32 }
  0x3c   :  { %p1587_p13 = scmp.ne.s32.totalorder %s56_s17, %s1586_s10  ;;  %p1591_p0 = scmp.lt.s32.totalorder %s56_s17, %s56_s17 }
  0x3d   :  { %p1592_p1 = scmp.lt.s32.totalorder %s1590_s11, %s1586_s10 }
  0x3f   :  { %p1593_p2 = por %p1592_p1, %p1591_p0 }
  0x41   :  { %p1594_p3 = pnand %p1593_p2, %p1587_p13 }
  0x43   :  { %1597 = shalt.err (!%p1594_p3)
}
  0x44   :  { %58 = dma.hbm_to_vmem [thread:$0]  %s1913_s3, 16, %s56_s17, [#allocation10]  }
  0x45   :  { %1620 = dma.done.wait [#allocation4], 1024  }
  0x46   :  { %1621 = vsyncadd [#allocation4], 4294966272 }
  0x47   :  { %1622 = dma.done.wait [#allocation7], 4096  }
  0x48   :  { %1623 = vsyncadd [#allocation7], 4294963200 }
  0x49   :  { %1624 = dma.done.wait [#allocation10], 16  }
  0x4a   :  { %1625 = vsyncadd [#allocation10], 4294967280  ;;  %v1634_v0 = vmov 0.0|0.0   ;;  %vm1635_vm0 = vmmov 0   ;;  %v1636_v1 = vmov 0.0   ;;  %v76_v2 = vld [vmem:[#allocation6] sm:$0xff] }
  0x4b   :  { %1268 = vmatprep.subr.bf16.mxu0 %v1634_v0  ;;  %985 = vmatprep.mubr.msk.f32.mxu0 %vm1635_vm0, %v1636_v1  ;;  %v77_v3 = vld [vmem:[#allocation6 + $0x8] sm:$0xff]  ;;  %v78_v4 = vld [vmem:[#allocation6 + $0x10] sm:$0xff]  ;;  %v79_v6 = vld [vmem:[#allocation6 + $0x18] sm:$0xff]  ;;  %s1637_s3 = smov [#allocation11]  }
  0x4c   :  { %1292 = vmatprep.subr.bf16.mxu1 %v1634_v0  ;;  %1020 = vmatprep.mubr.msk.f32.mxu1 %vm1635_vm0, %v1636_v1  ;;  %v1733_v5 = vpack.c.bf16 %v77_v3, %v76_v2  ;;  %v1736_v7 = vpack.c.bf16 %v79_v6, %v78_v4  ;;  %v80_v8 = vld [vmem:[#allocation6 + $0x20] sm:$0xff]  ;;  %v81_v9 = vld [vmem:[#allocation6 + $0x28] sm:$0xff]  ;;  %v82_v11 = vld [vmem:[#allocation6 + $0x30] sm:$0xff]  ;;  %s788_s28 = sshll.u32 %s1637_s3, 4  ;;  %s789_s28 = int_to_ptr.vmem [resolvable:$true] %s788_s28 }
  0x4d   :  { %v1742_v10 = vpack.c.bf16 %v81_v9, %v80_v8  ;;  %v83_v12 = vld [vmem:[#allocation6 + $0x38] sm:$0xff]  ;;  %v84_v14 = vld [vmem:[#allocation6 + $0x40] sm:$0xff]  ;;  %v85_v15 = vld [vmem:[#allocation6 + $0x48] sm:$0xff]  ;;  %s1598_s12 = scalar_lea.vmem %s789_s28, 128  ;;  %p1603_p5 = scmp.lt.s32.totalorder %s789_s28, %s789_s28 }
  0x4e   :  { %1270 = vmatpush3.bf16.msra.mxu0 %v1733_v5  ;;  %1294 = vmatpush3.bf16.msra.mxu1 %v1733_v5  ;;  %v1748_v13 = vpack.c.bf16 %v83_v12, %v82_v11  ;;  %v1754_v16 = vpack.c.bf16 %v85_v15, %v84_v14  ;;  %v86_v17 = vld [vmem:[#allocation6 + $0x50] sm:$0xff]  ;;  %v87_v18 = vld [vmem:[#allocation6 + $0x58] sm:$0xff]  ;;  %v88_v20 = vld [vmem:[#allocation6 + $0x60] sm:$0xff]  ;;  %p1599_p4 = scmp.ne.s32.totalorder %s789_s28, %s1598_s12  ;;  %p1604_p6 = scmp.lt.s32.totalorder %s1598_s12, %s1598_s12 }
  0x4f   :  { %1271 = vmatprep.subr.bf16.mxu0 %v1634_v0  ;;  %1295 = vmatprep.subr.bf16.mxu1 %v1634_v0  ;;  %v1760_v19 = vpack.c.bf16 %v87_v18, %v86_v17  ;;  %v89_v21 = vld [vmem:[#allocation6 + $0x68] sm:$0xff]  ;;  %v90_v23 = vld [vmem:[#allocation6 + $0x70] sm:$0xff]  ;;  %v91_v24 = vld [vmem:[#allocation6 + $0x78] sm:$0xff] }
  0x50   :  { %v1766_v22 = vpack.c.bf16 %v89_v21, %v88_v20  ;;  %v1772_v25 = vpack.c.bf16 %v91_v24, %v90_v23  ;;  %v93_v26 = vld [vmem:[#allocation3] sm:$0xff]  ;;  %v167_v31 = vld [vmem:[#allocation3 + $0x8] sm:$0xff]  ;;  %v241_v36 = vld [vmem:[#allocation3 + $0x10] sm:$0xff]  ;;  %p1605_p7 = por %p1604_p6, %p1603_p5 }
  0x51   :  { %v315_v41 = vld [vmem:[#allocation3 + $0x18] sm:$0xff]  ;;  %v389_v46 = vld [vmem:[#allocation3 + $0x20] sm:$0xff]  ;;  %v463_v51 = vld [vmem:[#allocation3 + $0x28] sm:$0xff] }
  0x52   :  { %1273 = vmatpush3.bf16.msra.mxu0 %v1736_v7  ;;  %1297 = vmatpush3.bf16.msra.mxu1 %v1736_v7  ;;  %v688_v56 = vld [vmem:[#allocation8] sm:$0xff]  ;;  %v689_v57 = vld [vmem:[#allocation8 + $0x8] sm:$0xff]  ;;  %v690_v58 = vld [vmem:[#allocation8 + $0x10] sm:$0xff]  ;;  %p1606_p8 = pnand %p1605_p7, %p1599_p4 }
  0x53   :  { %1274 = vmatprep.subr.bf16.mxu0 %v1634_v0  ;;  %1298 = vmatprep.subr.bf16.mxu1 %v1634_v0  ;;  %v1461_v59 = vpack.c.bf16 %v689_v57, %v688_v56  ;;  %v691_v60 = vld [vmem:[#allocation8 + $0x18] sm:$0xff]  ;;  %v692_v62 = vld [vmem:[#allocation8 + $0x20] sm:$0xff]  ;;  %v693_v63 = vld [vmem:[#allocation8 + $0x28] sm:$0xff] }
  0x54   :  { %v1464_v61 = vpack.c.bf16 %v691_v60, %v690_v58  ;;  %v1467_v2 = vpack.c.bf16 %v693_v63, %v692_v62  ;;  %v694_v3 = vld [vmem:[#allocation8 + $0x30] sm:$0xff]  ;;  %v695_v4 = vld [vmem:[#allocation8 + $0x38] sm:$0xff]  ;;  %v697_v6 = vld [vmem:[#allocation8 + $0x48] sm:$0xff] }
  0x55   :  { %v537_v8 = vld [vmem:[#allocation3 + $0x30] sm:$0xff]  ;;  %v699_v14 = vld [vmem:[#allocation8 + $0x58] sm:$0xff]  ;;  %v701_v17 = vld [vmem:[#allocation8 + $0x68] sm:$0xff] }
  0x56   :  { %1276 = vmatpush3.bf16.msra.mxu0 %v1742_v10  ;;  %1300 = vmatpush3.bf16.msra.mxu1 %v1742_v10  ;;  %v703_v20 = vld [vmem:[#allocation8 + $0x78] sm:$0xff] }
  0x57   :  { %1277 = vmatprep.subr.bf16.mxu0 %v1634_v0  ;;  %1301 = vmatprep.subr.bf16.mxu1 %v1634_v0 }
  0x5a   :  { %1279 = vmatpush3.bf16.msra.mxu0 %v1748_v13  ;;  %1303 = vmatpush3.bf16.msra.mxu1 %v1748_v13 }
  0x5b   :  { %1280 = vmatprep.subr.bf16.mxu0 %v1634_v0  ;;  %1304 = vmatprep.subr.bf16.mxu1 %v1634_v0 }
  0x5e   :  { %1282 = vmatpush3.bf16.msra.mxu0 %v1754_v16  ;;  %1306 = vmatpush3.bf16.msra.mxu1 %v1754_v16 }
  0x5f   :  { %1283 = vmatprep.subr.bf16.mxu0 %v1634_v0  ;;  %1307 = vmatprep.subr.bf16.mxu1 %v1634_v0 }
  0x62   :  { %1285 = vmatpush3.bf16.msra.mxu0 %v1760_v19  ;;  %1309 = vmatpush3.bf16.msra.mxu1 %v1760_v19 }
  0x63   :  { %1286 = vmatprep.subr.bf16.mxu0 %v1634_v0  ;;  %1310 = vmatprep.subr.bf16.mxu1 %v1634_v0 }
  0x66   :  { %1288 = vmatpush3.bf16.msra.mxu0 %v1766_v22  ;;  %1312 = vmatpush3.bf16.msra.mxu1 %v1766_v22 }
  0x67   :  { %1289 = vmatprep.subr.bf16.mxu0 %v1634_v0  ;;  %1313 = vmatprep.subr.bf16.mxu1 %v1634_v0 }
  0x6a   :  { %1291 = vmatpush3.bf16.msra.mxu0 %v1772_v25  ;;  %1315 = vmatpush3.bf16.msra.mxu1 %v1772_v25 }
  0x6b   :  { %1316 = vmatprep.subr.bf16.mxu0 %v1634_v0  ;;  %1340 = vmatprep.subr.bf16.mxu1 %v1634_v0 }
  0x6d   :  { %986 = vmatmul.mubr.f32.vlgmr.msra.gmra.mrb[0].mxu0 %v1636_v1 }
  0x6e   :  { %1318 = vmatpush3.bf16.msra.mxu0 %v1733_v5  ;;  %1055 = vmatprep.mubr.msk.f32.mxu0 %vm1635_vm0, %v1636_v1 }
  0x6f   :  { %1319 = vmatprep.subr.bf16.mxu0 %v1634_v0 }
  0x72   :  { %1321 = vmatpush3.bf16.msra.mxu0 %v1736_v7 }
  0x73   :  { %1322 = vmatprep.subr.bf16.mxu0 %v1634_v0 }
  0x76   :  { %1324 = vmatpush3.bf16.msra.mxu0 %v1742_v10 }
  0x77   :  { %1325 = vmatprep.subr.bf16.mxu0 %v1634_v0 }
  0x7a   :  { %1327 = vmatpush3.bf16.msra.mxu0 %v1748_v13 }
  0x7b   :  { %1328 = vmatprep.subr.bf16.mxu0 %v1634_v0 }
  0x7e   :  { %1330 = vmatpush3.bf16.msra.mxu0 %v1754_v16 }
  0x7f   :  { %1331 = vmatprep.subr.bf16.mxu0 %v1634_v0 }
  0x82   :  { %1333 = vmatpush3.bf16.msra.mxu0 %v1760_v19 }
  0x83   :  { %1334 = vmatprep.subr.bf16.mxu0 %v1634_v0 }
  0x86   :  { %1336 = vmatpush3.bf16.msra.mxu0 %v1766_v22 }
  0x87   :  { %1337 = vmatprep.subr.bf16.mxu0 %v1634_v0 }
  0x8a   :  { %1339 = vmatpush3.bf16.msra.mxu0 %v1772_v25 }
  0x8b   :  { %1364 = vmatprep.subr.bf16.mxu0 %v1634_v0 }
 0x140   :  { %v160_v27 = vpop.f32.mrb[0].mxu0 }
 0x141   :  { %v164_v28 = vadd.f32 %v160_v27, %v93_v26  ;;  %v987_v29 = vpop.f32.mrb[1].mxu0  ;;  %v799_v27 = vld [vmem:[#allocation9] ss:$0 sm:$0xff] }
 0x143   :  { %1494 = vtanh.f32 %v164_v28 }
 0x14d   :  { %v1495_v30 = vpop.eup %1494 }
 0x14e   :  { %1021 = vmatmul.mubr.f32.vlgmr.msra.gmra.mrb[0].mxu1 %v1495_v30 }
 0x14f   :  { %1342 = vmatpush3.bf16.msra.mxu1 %v1733_v5  ;;  %1090 = vmatprep.mubr.msk.f32.mxu1 %vm1635_vm0, %v1636_v1 }
 0x150   :  { %1343 = vmatprep.subr.bf16.mxu1 %v1634_v0 }
 0x153   :  { %1345 = vmatpush3.bf16.msra.mxu1 %v1736_v7 }
 0x154   :  { %1346 = vmatprep.subr.bf16.mxu1 %v1634_v0 }
 0x157   :  { %1348 = vmatpush3.bf16.msra.mxu1 %v1742_v10 }
 0x158   :  { %1349 = vmatprep.subr.bf16.mxu1 %v1634_v0 }
 0x15b   :  { %1351 = vmatpush3.bf16.msra.mxu1 %v1748_v13 }
 0x15c   :  { %1352 = vmatprep.subr.bf16.mxu1 %v1634_v0 }
 0x15f   :  { %1354 = vmatpush3.bf16.msra.mxu1 %v1754_v16 }
 0x160   :  { %1355 = vmatprep.subr.bf16.mxu1 %v1634_v0 }
 0x163   :  { %1357 = vmatpush3.bf16.msra.mxu1 %v1760_v19 }
 0x164   :  { %1358 = vmatprep.subr.bf16.mxu1 %v1634_v0 }
 0x167   :  { %1360 = vmatpush3.bf16.msra.mxu1 %v1766_v22 }
 0x168   :  { %1361 = vmatprep.subr.bf16.mxu1 %v1634_v0 }
 0x16b   :  { %1363 = vmatpush3.bf16.msra.mxu1 %v1772_v25 }
 0x16c   :  { %1388 = vmatprep.subr.bf16.mxu1 %v1634_v0 }
 0x221   :  { %v234_v32 = vpop.f32.mrb[0].mxu1 }
 0x222   :  { %v238_v33 = vadd.f32 %v234_v32, %v167_v31  ;;  %v1022_v34 = vpop.f32.mrb[1].mxu1 }
 0x224   :  { %1496 = vtanh.f32 %v238_v33 }
 0x22e   :  { %v1497_v35 = vpop.eup %1496 }
 0x22f   :  { %1056 = vmatmul.mubr.f32.vlgmr.msra.gmra.mrb[2].mxu0 %v1497_v35 }
 0x230   :  { %1366 = vmatpush3.bf16.msra.mxu0 %v1733_v5  ;;  %1125 = vmatprep.mubr.msk.f32.mxu0 %vm1635_vm0, %v1636_v1 }
 0x231   :  { %1367 = vmatprep.subr.bf16.mxu0 %v1634_v0 }
 0x234   :  { %1369 = vmatpush3.bf16.msra.mxu0 %v1736_v7 }
 0x235   :  { %1370 = vmatprep.subr.bf16.mxu0 %v1634_v0 }
 0x238   :  { %1372 = vmatpush3.bf16.msra.mxu0 %v1742_v10 }
 0x239   :  { %1373 = vmatprep.subr.bf16.mxu0 %v1634_v0 }
 0x23c   :  { %1375 = vmatpush3.bf16.msra.mxu0 %v1748_v13 }
 0x23d   :  { %1376 = vmatprep.subr.bf16.mxu0 %v1634_v0 }
 0x240   :  { %1378 = vmatpush3.bf16.msra.mxu0 %v1754_v16 }
 0x241   :  { %1379 = vmatprep.subr.bf16.mxu0 %v1634_v0 }
 0x244   :  { %1381 = vmatpush3.bf16.msra.mxu0 %v1760_v19 }
 0x245   :  { %1382 = vmatprep.subr.bf16.mxu0 %v1634_v0 }
 0x248   :  { %1384 = vmatpush3.bf16.msra.mxu0 %v1766_v22 }
 0x249   :  { %1385 = vmatprep.subr.bf16.mxu0 %v1634_v0 }
 0x24c   :  { %1387 = vmatpush3.bf16.msra.mxu0 %v1772_v25 }
 0x24d   :  { %1412 = vmatprep.subr.bf16.mxu0 %v1634_v0 }
 0x302   :  { %v308_v37 = vpop.f32.mrb[2].mxu0 }
 0x303   :  { %v312_v38 = vadd.f32 %v308_v37, %v241_v36  ;;  %v1057_v39 = vpop.f32.mrb[3].mxu0 }
 0x305   :  { %1498 = vtanh.f32 %v312_v38 }
 0x30f   :  { %v1499_v40 = vpop.eup %1498 }
 0x310   :  { %1091 = vmatmul.mubr.f32.vlgmr.msra.gmra.mrb[2].mxu1 %v1499_v40 }
 0x311   :  { %1390 = vmatpush3.bf16.msra.mxu1 %v1733_v5  ;;  %1160 = vmatprep.mubr.msk.f32.mxu1 %vm1635_vm0, %v1636_v1 }
 0x312   :  { %1391 = vmatprep.subr.bf16.mxu1 %v1634_v0 }
 0x315   :  { %1393 = vmatpush3.bf16.msra.mxu1 %v1736_v7 }
 0x316   :  { %1394 = vmatprep.subr.bf16.mxu1 %v1634_v0 }
 0x319   :  { %1396 = vmatpush3.bf16.msra.mxu1 %v1742_v10 }
 0x31a   :  { %1397 = vmatprep.subr.bf16.mxu1 %v1634_v0 }
 0x31d   :  { %1399 = vmatpush3.bf16.msra.mxu1 %v1748_v13 }
 0x31e   :  { %1400 = vmatprep.subr.bf16.mxu1 %v1634_v0 }
 0x321   :  { %1402 = vmatpush3.bf16.msra.mxu1 %v1754_v16 }
 0x322   :  { %1403 = vmatprep.subr.bf16.mxu1 %v1634_v0 }
 0x325   :  { %1405 = vmatpush3.bf16.msra.mxu1 %v1760_v19 }
 0x326   :  { %1406 = vmatprep.subr.bf16.mxu1 %v1634_v0 }
 0x329   :  { %1408 = vmatpush3.bf16.msra.mxu1 %v1766_v22 }
 0x32a   :  { %1409 = vmatprep.subr.bf16.mxu1 %v1634_v0 }
 0x32d   :  { %1411 = vmatpush3.bf16.msra.mxu1 %v1772_v25 }
 0x32e   :  { %1436 = vmatprep.subr.bf16.mxu1 %v1634_v0 }
 0x3e3   :  { %v382_v42 = vpop.f32.mrb[2].mxu1 }
 0x3e4   :  { %v386_v43 = vadd.f32 %v382_v42, %v315_v41  ;;  %v1092_v44 = vpop.f32.mrb[3].mxu1 }
 0x3e6   :  { %1500 = vtanh.f32 %v386_v43 }
 0x3f0   :  { %v1501_v45 = vpop.eup %1500 }
 0x3f1   :  { %1126 = vmatmul.mubr.f32.vlgmr.msra.gmra.mrb[4].mxu0 %v1501_v45 }
 0x3f2   :  { %1414 = vmatpush3.bf16.msra.mxu0 %v1733_v5  ;;  %1195 = vmatprep.mubr.msk.f32.mxu0 %vm1635_vm0, %v1636_v1 }
 0x3f3   :  { %1415 = vmatprep.subr.bf16.mxu0 %v1634_v0 }
 0x3f6   :  { %1417 = vmatpush3.bf16.msra.mxu0 %v1736_v7 }
 0x3f7   :  { %1418 = vmatprep.subr.bf16.mxu0 %v1634_v0 }
 0x3fa   :  { %1420 = vmatpush3.bf16.msra.mxu0 %v1742_v10 }
 0x3fb   :  { %1421 = vmatprep.subr.bf16.mxu0 %v1634_v0 }
 0x3fe   :  { %1423 = vmatpush3.bf16.msra.mxu0 %v1748_v13 }
 0x3ff   :  { %1424 = vmatprep.subr.bf16.mxu0 %v1634_v0 }
 0x402   :  { %1426 = vmatpush3.bf16.msra.mxu0 %v1754_v16 }
 0x403   :  { %1427 = vmatprep.subr.bf16.mxu0 %v1634_v0 }
 0x406   :  { %1429 = vmatpush3.bf16.msra.mxu0 %v1760_v19 }
 0x407   :  { %1430 = vmatprep.subr.bf16.mxu0 %v1634_v0 }
 0x40a   :  { %1432 = vmatpush3.bf16.msra.mxu0 %v1766_v22 }
 0x40b   :  { %1433 = vmatprep.subr.bf16.mxu0 %v1634_v0 }
 0x40e   :  { %1435 = vmatpush3.bf16.msra.mxu0 %v1772_v25 }
 0x40f   :  { %1460 = vmatprep.subr.bf16.mxu0 %v1634_v0 }
 0x4c4   :  { %v456_v47 = vpop.f32.mrb[4].mxu0 }
 0x4c5   :  { %v460_v48 = vadd.f32 %v456_v47, %v389_v46  ;;  %v1127_v49 = vpop.f32.mrb[5].mxu0 }
 0x4c7   :  { %1502 = vtanh.f32 %v460_v48 }
 0x4d1   :  { %v1503_v50 = vpop.eup %1502 }
 0x4d2   :  { %1161 = vmatmul.mubr.f32.vlgmr.msra.gmra.mrb[4].mxu1 %v1503_v50 }
 0x4d3   :  { %1438 = vmatpush3.bf16.msra.mxu1 %v1733_v5  ;;  %1230 = vmatprep.mubr.msk.f32.mxu1 %vm1635_vm0, %v1636_v1  ;;  %v1470_v5 = vpack.c.bf16 %v695_v4, %v694_v3 }
 0x4d4   :  { %1439 = vmatprep.subr.bf16.mxu1 %v1634_v0 }
 0x4d7   :  { %1441 = vmatpush3.bf16.msra.mxu1 %v1736_v7 }
 0x4d8   :  { %1442 = vmatprep.subr.bf16.mxu1 %v1634_v0 }
 0x4db   :  { %1444 = vmatpush3.bf16.msra.mxu1 %v1742_v10 }
 0x4dc   :  { %1445 = vmatprep.subr.bf16.mxu1 %v1634_v0 }
 0x4df   :  { %1447 = vmatpush3.bf16.msra.mxu1 %v1748_v13  ;;  %v698_v13 = vld [vmem:[#allocation8 + $0x50] sm:$0xff] }
 0x4e0   :  { %1448 = vmatprep.subr.bf16.mxu1 %v1634_v0  ;;  %v1476_v15 = vpack.c.bf16 %v699_v14, %v698_v13 }
 0x4e3   :  { %1450 = vmatpush3.bf16.msra.mxu1 %v1754_v16  ;;  %v700_v16 = vld [vmem:[#allocation8 + $0x60] sm:$0xff] }
 0x4e4   :  { %1451 = vmatprep.subr.bf16.mxu1 %v1634_v0  ;;  %v1479_v18 = vpack.c.bf16 %v701_v17, %v700_v16 }
 0x4e7   :  { %1453 = vmatpush3.bf16.msra.mxu1 %v1760_v19  ;;  %v702_v19 = vld [vmem:[#allocation8 + $0x70] sm:$0xff] }
 0x4e8   :  { %1454 = vmatprep.subr.bf16.mxu1 %v1634_v0  ;;  %v1482_v21 = vpack.c.bf16 %v703_v20, %v702_v19 }
 0x4eb   :  { %1456 = vmatpush3.bf16.msra.mxu1 %v1766_v22  ;;  %v611_v22 = vld [vmem:[#allocation3 + $0x38] sm:$0xff] }
 0x4ec   :  { %1457 = vmatprep.subr.bf16.mxu1 %v1634_v0 }
 0x4ef   :  { %1459 = vmatpush3.bf16.msra.mxu1 %v1772_v25 }
 0x5a5   :  { %v530_v52 = vpop.f32.mrb[4].mxu1 }
 0x5a6   :  { %v534_v53 = vadd.f32 %v530_v52, %v463_v51  ;;  %v1162_v54 = vpop.f32.mrb[5].mxu1 }
 0x5a8   :  { %1504 = vtanh.f32 %v534_v53 }
 0x5b2   :  { %v1505_v55 = vpop.eup %1504 }
 0x5b3   :  { %1196 = vmatmul.mubr.f32.vlgmr.msra.gmra.mrb[6].mxu0 %v1505_v55 }
 0x5b4   :  { %1265 = vmatprep.mubr.msk.f32.mxu0 %vm1635_vm0, %v1636_v1  ;;  %1462 = vmatpush3.bf16.msra.mxu0 %v1461_v59  ;;  %v696_v1 = vld [vmem:[#allocation8 + $0x40] sm:$0xff] }
 0x5b5   :  { %1463 = vmatprep.subr.bf16.mxu0 %v1634_v0  ;;  %v1473_v7 = vpack.c.bf16 %v697_v6, %v696_v1 }
 0x5b8   :  { %1465 = vmatpush3.bf16.msra.mxu0 %v1464_v61 }
 0x5b9   :  { %1466 = vmatprep.subr.bf16.mxu0 %v1634_v0 }
 0x5bc   :  { %1468 = vmatpush3.bf16.msra.mxu0 %v1467_v2 }
 0x5bd   :  { %1469 = vmatprep.subr.bf16.mxu0 %v1634_v0 }
 0x5c0   :  { %1471 = vmatpush3.bf16.msra.mxu0 %v1470_v5 }
 0x5c1   :  { %1472 = vmatprep.subr.bf16.mxu0 %v1634_v0 }
 0x5c4   :  { %1474 = vmatpush3.bf16.msra.mxu0 %v1473_v7 }
 0x5c5   :  { %1475 = vmatprep.subr.bf16.mxu0 %v1634_v0 }
 0x5c8   :  { %1477 = vmatpush3.bf16.msra.mxu0 %v1476_v15 }
 0x5c9   :  { %1478 = vmatprep.subr.bf16.mxu0 %v1634_v0 }
 0x5cc   :  { %1480 = vmatpush3.bf16.msra.mxu0 %v1479_v18 }
 0x5cd   :  { %1481 = vmatprep.subr.bf16.mxu0 %v1634_v0 }
 0x5d0   :  { %1483 = vmatpush3.bf16.msra.mxu0 %v1482_v21 }
 0x686   :  { %v604_v9 = vpop.f32.mrb[6].mxu0 }
 0x687   :  { %v608_v10 = vadd.f32 %v604_v9, %v537_v8  ;;  %v1197_v11 = vpop.f32.mrb[7].mxu0 }
 0x689   :  { %1506 = vtanh.f32 %v608_v10 }
 0x693   :  { %v1507_v12 = vpop.eup %1506 }
 0x694   :  { %1231 = vmatmul.mubr.f32.vlgmr.msra.gmra.mrb[6].mxu1 %v1507_v12 }
 0x767   :  { %v678_v23 = vpop.f32.mrb[6].mxu1 }
 0x768   :  { %v682_v24 = vadd.f32 %v678_v23, %v611_v22  ;;  %v1232_v25 = vpop.f32.mrb[7].mxu1 }
 0x76a   :  { %1508 = vtanh.f32 %v682_v24 }
 0x774   :  { %v1509_v26 = vpop.eup %1508 }
 0x775   :  { %1266 = vmatmul.mubr.f32.vlgmr.msra.gmra.mrb[8].mxu0 %v1509_v26 }
 0x848   :  { %v777_v28 = vpop.f32.mrb[8].mxu0 }
 0x849   :  { %v778_v29 = vadd.f32 %v799_v27, %v777_v28  ;;  %v1267_v30 = vpop.f32.mrb[9].mxu0 }
 0x84b   :  { %781 = vst [vmem:[#allocation11] sm:$0xff] %v778_v29 }
 0x84c   :  { %1609 = shalt.err (!%p1606_p8)
}
 0x84d   :  { %s1610_s14 = scalar_lea.hbm %s1914_s4, 128 }
 0x84e   :  { %p1611_p9 = scmp.ne.s32.totalorder %s1914_s4, %s1610_s14  ;;  %p1614_p10 = scmp.lt.u32.totalorder %s1610_s14, %s1914_s4 }
 0x850   :  { %p1616_p11 = pnand %p1614_p10, %p1611_p9 }
 0x852   :  { %1619 = shalt.err (!%p1616_p11)
}
 0x853   :  { %791 = dma.vmem_to_hbm [thread:$0]  %s789_s28, 128, %s1914_s4, [#allocation5]  }
 0x854   :  { %1626 = dma.done.wait [#allocation5], 128  }
 0x855   :  { %1627 = vsyncadd [#allocation5], 4294967168 }
 0x856   :  { %795 = vsyncpa [#allocation4], 1 }
 0x857   :  { %796 = vsyncpa [#allocation7], 1 }
 0x858   :  { %797 = vsyncpa [#allocation10], 1 }
 0x859   :  { %798 = vsyncpa [#allocation5], 1 }

</bundles_post_ra>
